<compile_context>
chip_gen: v5e
topology: v5e:2x2
jax: 0.10.0
libtpu: 0.0.40
codegen_flags: <defaults>
</compile_context>

<pallas_src>
import math

import jax
import jax.numpy as jnp
import numpy as np
from jax.experimental import pallas as pl
from jax.experimental.pallas import tpu as pltpu

# ----------------------- module hyper-parameters (small, consistent) -----------------------
NEWS_EMBED_DIM = 32
NUM_FILTERS = 32
DENSE_ATT_H1 = 16
DENSE_ATT_H2 = 16
USER_VECTOR_DIM = 32          # must equal NEWS_EMBED_DIM for the module's cat/bmm to be consistent
NUM_HEADS = 2
DROPOUT_P = 0.2               # identity in eval mode
USR_ENG_NUM_EMB = 9
USR_ENG_EMB_DIM = 16
MATRIX_SIZE = 3
TIME_EMB_DIM = 8              # unused (add_relevance_control=False)
ADD_RELEVANCE_CONTROL = False
ADD_AVOIDANCE_AWARENESS = True

BATCH = 4
HIST_LEN = 8

HEAD_DIM = USER_VECTOR_DIM // NUM_HEADS
D_CAT = NEWS_EMBED_DIM + (USR_ENG_EMB_DIM if ADD_AVOIDANCE_AWARENESS else 0)   # per-news dim after engagement concat
D_ALL = USER_VECTOR_DIM + (USR_ENG_EMB_DIM if ADD_AVOIDANCE_AWARENESS else 0)  # linear3 output dim


# ------------------------------------- Pallas kernel ---------------------------------------
def _aw_user_encoder_kernel(
    hist2d_ref, cand_tiled_ref, cand_ref, mask_ref,
    w_hist_ref, w_cand_ref, b_cand_ref,
    w_in_ref, b_in_ref, w_out_ref, b_out_ref,
    w3cnn_ref, w3self_ref, b3_ref,
    wd1h_ref, wd2_ref, bd2_ref, wd3row_ref, bd3_ref,
    scores_ref,
):
    f32 = jnp.float32
    bf16 = jnp.bfloat16
    H, B = HIST_LEN, BATCH
    HB = H * B
    F, E, dh = NUM_FILTERS, USER_VECTOR_DIM, HEAD_DIM

    hist2d = hist2d_ref[...]                    # (HB, Dc) bf16, rows ordered (h, b), h-major

    # ---- ONE fused hist-side MXU push: [linear1-center | linear1-left | linear1-right | linear2-hist]
    # Lane-dense N = 3F + E = 128 result; the 32-lane slices below land on XLU/VPU slack.
    y = jnp.dot(hist2d, w_hist_ref[...], preferred_element_type=f32)            # (HB, 128) f32

    # ---- ONE fused cand-side MXU push (cand pre-tiled over history rows in the wrapper):
    #      [linear1-cand (+b1) | linear2-cand (+b2) | DenseAtt1-cand (+bd1)]
    yc = (jnp.dot(cand_tiled_ref[...], w_cand_ref[...], preferred_element_type=f32)
          + b_cand_ref[...])                                                     # (HB, 80) f32

    # circular +/-1 history shift of the linear1 side branches, applied to the partial matmul
    # results along the leading (history) axis — a 4-vreg rotate either way
    # (pltpu.roll(x2d, shift=B, axis=0) is the drop-in equivalent at larger sizes).
    yC = y[:, 0 * F:1 * F].reshape(H, B, F)
    yL = y[:, 1 * F:2 * F].reshape(H, B, F)
    yR = y[:, 2 * F:3 * F].reshape(H, B, F)
    yL = jnp.concatenate([yL[H - 1:], yL[:H - 1]], axis=0)                       # row h uses hist[h-1]
    yR = jnp.concatenate([yR[1:], yR[:1]], axis=0)                               # row h uses hist[h+1]
    hist_cnn = (yC + yL + yR).reshape(HB, F) + yc[:, 0:F]                        # linear1 output (HB, F)
    hn2d = y[:, 3 * F:3 * F + E] + yc[:, F:F + E]                                # linear2 output (HB, E)

    # ---- nn.MultiheadAttention with batch_first=False semantics: users attend to users within
    #      the same history slot.  ONE fused q|k|v push; per head, a single block-diagonal-masked
    #      (HB,HB) score matmul and a single (HB,HB)@(HB,dh) p@v matmul.
    qkv = (jnp.dot(hn2d.astype(bf16), w_in_ref[...], preferred_element_type=f32)
           + b_in_ref[...])                                                       # (HB, 3E) f32
    mask = mask_ref[...]                        # (HB, HB): 0 in-block, -1e30 off-block (finite)
    scale = 1.0 / math.sqrt(dh)
    trans_b = (((1,), (1,)), ((), ()))

    hist_self = None
    for head in range(NUM_HEADS):
        q = (qkv[:, head * dh:(head + 1) * dh] * scale).astype(bf16)
        k = qkv[:, E + head * dh:E + (head + 1) * dh].astype(bf16)
        v = qkv[:, 2 * E + head * dh:2 * E + (head + 1) * dh].astype(bf16)
        s = jax.lax.dot_general(q, k, trans_b, preferred_element_type=f32) + mask   # (HB, HB)
        s = s - jnp.max(s, axis=-1, keepdims=True)           # off-block -> exp underflows to 0
        e = jnp.exp(s)
        p = (e * pl.reciprocal(jnp.sum(e, axis=-1, keepdims=True), approx=True)).astype(bf16)
        o = jnp.dot(p, v, preferred_element_type=f32)                                # (HB, dh) f32
        contrib = jnp.dot(o.astype(bf16), w_out_ref[head * dh:(head + 1) * dh, :],
                          preferred_element_type=f32)
        hist_self = contrib if hist_self is None else hist_self + contrib
    hist_self = hist_self + b_out_ref[...]                                           # (HB, E) f32

    # ---- linear3 over (cnn branch, self-attention branch): pre-split weights, summed partial dots
    hist_all = (jnp.dot(hist_cnn.astype(bf16), w3cnn_ref[...], preferred_element_type=f32)
                + jnp.dot(hist_self.astype(bf16), w3self_ref[...], preferred_element_type=f32)
                + b3_ref[...])                                                        # (HB, D_ALL) f32

    # ---- DenseAttention: Linear -> tanh -> Linear -> tanh -> Linear(1)
    a = jnp.tanh(jnp.dot(hist_all.astype(bf16), wd1h_ref[...], preferred_element_type=f32)
                 + yc[:, F + E:])                                                     # (HB, H1)
    a = jnp.tanh(jnp.dot(a.astype(bf16), wd2_ref[...], preferred_element_type=f32)
                 + bd2_ref[...])                                                      # (HB, H2)
    # final (H2 -> 1) projection: VPU multiply + lane reduce (no Nx1 MXU matmul)
    a3 = a.reshape(H, B, DENSE_ATT_H2)
    logits = jnp.sum(a3 * wd3row_ref[...], axis=-1, keepdims=True) + bd3_ref[...]     # (H, B, 1)

    m = jnp.max(logits, axis=0, keepdims=True)
    e = jnp.exp(logits - m)
    att = e * pl.reciprocal(jnp.sum(e, axis=0, keepdims=True), approx=True)           # (H, B, 1)

    user_vec = jnp.sum(att * hist_all.reshape(H, B, D_ALL), axis=0)                   # (B, D_ALL) f32
    # final score: exact-f32 candidate against the f32 user vector
    scores_ref[...] = jnp.sum(cand_ref[...] * user_vec, axis=-1, keepdims=True)       # (B, 1)


# -------------------------------------- parameters -----------------------------------------
def init_params(key):
    def dense(k, fan_in, fan_out):
        k1, k2 = jax.random.split(k)
        w = jax.random.normal(k1, (fan_in, fan_out), jnp.float32) * 0.05
        b = jax.random.normal(k2, (1, fan_out), jnp.float32) * 0.05
        return w, b

    keys = jax.random.split(key, 9)
    p = {}
    p["user_eng_emb"] = jax.random.normal(
        keys[0], (USR_ENG_NUM_EMB, USR_ENG_EMB_DIM), jnp.float32) * 0.05

    in1 = NEWS_EMBED_DIM * 4 + (USR_ENG_EMB_DIM * 4 if ADD_AVOIDANCE_AWARENESS else 0)
    p["w1"], p["b1"] = dense(keys[1], in1, NUM_FILTERS)

    in2 = NEWS_EMBED_DIM * 2 + (USR_ENG_EMB_DIM * 2 if ADD_AVOIDANCE_AWARENESS else 0)
    p["w2"], p["b2"] = dense(keys[2], in2, USER_VECTOR_DIM)

    # MultiheadAttention in/out projections (stored [in, out])
    p["w_in"], p["b_in"] = dense(keys[3], USER_VECTOR_DIM, 3 * USER_VECTOR_DIM)
    p["w_out"], p["b_out"] = dense(keys[4], USER_VECTOR_DIM, USER_VECTOR_DIM)

    p["w3"], p["b3"] = dense(keys[5], NUM_FILTERS + USER_VECTOR_DIM, D_ALL)

    da_in = USER_VECTOR_DIM * 2 + (USR_ENG_EMB_DIM * 2 if ADD_AVOIDANCE_AWARENESS else 0)
    p["wd1"], p["bd1"] = dense(keys[6], da_in, DENSE_ATT_H1)
    p["wd2"], p["bd2"] = dense(keys[7], DENSE_ATT_H1, DENSE_ATT_H2)
    p["wd3"], p["bd3"] = dense(keys[8], DENSE_ATT_H2, 1)
    return p


def _concat_engagement(params, hist_news_vector, cand_news_vector,
                       hist_av_idx, hist_epi_idx, cand_av_idx, cand_epi_idx):
    if not ADD_AVOIDANCE_AWARENESS:
        return hist_news_vector, cand_news_vector
    hist_idx = hist_epi_idx * MATRIX_SIZE + hist_av_idx
    hist_eng = jnp.take(params["user_eng_emb"], hist_idx, axis=0)
    hist = jnp.concatenate([hist_news_vector, hist_eng], axis=-1)
    cand_idx = cand_epi_idx * MATRIX_SIZE + cand_av_idx
    cand_eng = jnp.take(params["user_eng_emb"], cand_idx, axis=0)
    cand = jnp.concatenate([cand_news_vector, cand_eng], axis=-1)
    return hist, cand


def _fuse_and_cast_params(p):
    """Trace-time weight fusion along the output (N) axis + bf16 casts, so the kernel never
    concatenates along the lane axis and every MXU push sees bf16 operands."""
    bf16 = jnp.bfloat16
    Dc, F = D_CAT, NUM_FILTERS

    w1 = p["w1"]                                   # rows: [left | center | right | cand]
    w1l, w1c, w1r, w1cand = w1[0:Dc], w1[Dc:2 * Dc], w1[2 * Dc:3 * Dc], w1[3 * Dc:4 * Dc]
    w2 = p["w2"]                                   # rows: [cand | hist]
    w2cand, w2h = w2[:Dc], w2[Dc:]
    w3 = p["w3"]                                   # rows: [cnn branch | self-attn branch]
    w3cnn, w3self = w3[:F], w3[F:]
    wd1 = p["wd1"]                                 # rows: [hist_all | cand]
    wd1h, wd1cand = wd1[:D_ALL], wd1[D_ALL:]

    # (a) ONE hist-side push: N = 3F + E = 128 (exactly lane-dense result)
    w_hist = jnp.concatenate([w1c, w1l, w1r, w2h], axis=1).astype(bf16)            # (Dc, 128)
    # (b) ONE cand-side push: N = F + E + H1 = 80, biases folded in
    w_cand = jnp.concatenate([w1cand, w2cand, wd1cand], axis=1).astype(bf16)       # (Dc, 80)
    b_cand = jnp.concatenate([p["b1"], p["b2"], p["bd1"]], axis=1)                 # (1, 80) f32

    return (w_hist, w_cand, b_cand,
            p["w_in"].astype(bf16), p["b_in"],               # (c) fused q|k|v projection
            p["w_out"].astype(bf16), p["b_out"],
            w3cnn.astype(bf16), w3self.astype(bf16), p["b3"],
            wd1h.astype(bf16), p["wd2"].astype(bf16), p["bd2"],
            jnp.transpose(p["wd3"]), p["bd3"])


# -------------------------------------- kernel wrapper -------------------------------------
@jax.jit
def aw_user_encoder(params, hist_news_vector, cand_news_vector,
                    hist_av_idx, hist_epi_idx, cand_av_idx, cand_epi_idx,
                    cand_time_elapsed, cand_ctr):
    # glue: engagement-embedding lookup + feature concat (gather stays outside the kernel)
    hist, cand = _concat_engagement(params, hist_news_vector, cand_news_vector,
                                    hist_av_idx, hist_epi_idx, cand_av_idx, cand_epi_idx)
    # dropout1/2/3: eval-mode identity.
    # TODO(synk): add_relevance_control path (AvoidanceAwareRelevancePredictor + gate_eta) not
    # implemented (predictor source not provided); cand_time_elapsed / cand_ctr are unused.
    del cand_time_elapsed, cand_ctr

    B, H, Dc = hist.shape
    HB = H * B

    # Layout plumbing in plain JAX (fused/constant-folded by XLA around the call):
    #  * history-major (h, b) row ordering so the +/-1 history shift is a leading-axis rotate and
    #    the batch-mixing MHA becomes block-diagonal over contiguous row blocks,
    #  * candidate features pre-tiled over history rows so every cand-dependent partial comes out
    #    of one matmul with no in-kernel broadcasts,
    #  * bf16 casts for every MXU operand (accumulation stays f32 in-kernel; exact-f32 cand kept
    #    separately for the final score dot).
    hist2d = jnp.transpose(hist, (1, 0, 2)).reshape(HB, Dc).astype(jnp.bfloat16)
    cand_tiled = jnp.broadcast_to(cand[None], (H, B, Dc)).reshape(HB, Dc).astype(jnp.bfloat16)

    # additive block-diagonal mask: row i = (h, b) may only attend to rows with the same h
    blk = jnp.arange(HB, dtype=jnp.int32) // B
    mask = jnp.where(blk[:, None] == blk[None, :], 0.0, -1e30).astype(jnp.float32)

    weights = _fuse_and_cast_params(params)

    # TODO(synk): at serving scale, add a candidate axis (score C candidates per user per call) on
    # a dimension_semantics=("parallel",...) grid (v7x: 2 TCs) with a lane-dense (B, C) output
    # slab; omitted here to keep the module's forward signature (one candidate per user, users
    # coupled across the batch by the MHA).  Total resident data is ~40 KB -> VMEM is a non-issue.
    vmem = pl.BlockSpec(memory_space=pltpu.MemorySpace.VMEM)
    scores = pl.pallas_call(
        _aw_user_encoder_kernel,
        out_shape=jax.ShapeDtypeStruct((B, 1), jnp.float32),
        in_specs=[vmem] * (4 + len(weights)),
        out_specs=vmem,
    )(hist2d, cand_tiled, cand, mask, *weights)
    return scores.reshape(B)


# ----------------------------------- pure-JAX reference ------------------------------------
def aw_user_encoder_ref(params, hist_news_vector, cand_news_vector,
                        hist_av_idx, hist_epi_idx, cand_av_idx, cand_epi_idx,
                        cand_time_elapsed, cand_ctr):
    hist, cand = _concat_engagement(params, hist_news_vector, cand_news_vector,
                                    hist_av_idx, hist_epi_idx, cand_av_idx, cand_epi_idx)
    B, H, Dc = hist.shape
    E, dh = USER_VECTOR_DIM, HEAD_DIM
    rep_cand = jnp.broadcast_to(cand[:, None, :], (B, H, Dc))
    hist_left = jnp.concatenate([hist[:, -1:, :], hist[:, :-1, :]], axis=1)
    hist_right = jnp.concatenate([hist[:, 1:, :], hist[:, :1, :]], axis=1)
    hist_cnn = jnp.concatenate([hist_left, hist, hist_right, rep_cand], -1) @ params["w1"] + params["b1"]
    hist_news = jnp.concatenate([rep_cand, hist], -1) @ params["w2"] + params["b2"]
    qkv = hist_news @ params["w_in"] + params["b_in"]
    q, k, v = qkv[..., :E], qkv[..., E:2 * E], qkv[..., 2 * E:]
    outs = []
    for h in range(NUM_HEADS):
        qh = q[..., h * dh:(h + 1) * dh] / math.sqrt(dh)
        kh = k[..., h * dh:(h + 1) * dh]
        vh = v[..., h * dh:(h + 1) * dh]
        s = jnp.einsum("bhd,chd->bch", qh, kh)          # attention across batch, per hist position
        p = jax.nn.softmax(s, axis=1)
        outs.append(jnp.einsum("bch,chd->bhd", p, vh))
    hist_self = jnp.concatenate(outs, -1) @ params["w_out"] + params["b_out"]
    hist_all = jnp.concatenate([hist_cnn, hist_self], -1) @ params["w3"] + params["b3"]
    att_in = jnp.concatenate([hist_all, rep_cand], -1)
    a = jnp.tanh(att_in @ params["wd1"] + params["bd1"])
    a = jnp.tanh(a @ params["wd2"] + params["bd2"])
    a = (a @ params["wd3"] + params["bd3"])[..., 0]
    p = jax.nn.softmax(a, axis=-1)
    user_vec = jnp.einsum("bh,bhd->bd", p, hist_all)
    return jnp.sum(cand * user_vec, axis=-1)


# ------------------------------------------ main -------------------------------------------
if __name__ == "__main__":
    key = jax.random.PRNGKey(0)
    kp, k1, k2, k3, k4, k5, k6, k7, k8 = jax.random.split(key, 9)
    params = init_params(kp)

    hist_news_vector = jax.random.normal(k1, (BATCH, HIST_LEN, NEWS_EMBED_DIM), jnp.float32)
    cand_news_vector = jax.random.normal(k2, (BATCH, NEWS_EMBED_DIM), jnp.float32)
    hist_av_idx = jax.random.randint(k3, (BATCH, HIST_LEN), 0, MATRIX_SIZE, dtype=jnp.int32)
    hist_epi_idx = jax.random.randint(k4, (BATCH, HIST_LEN), 0, MATRIX_SIZE, dtype=jnp.int32)
    cand_av_idx = jax.random.randint(k5, (BATCH,), 0, MATRIX_SIZE, dtype=jnp.int32)
    cand_epi_idx = jax.random.randint(k6, (BATCH,), 0, MATRIX_SIZE, dtype=jnp.int32)
    cand_time_elapsed = jax.random.uniform(k7, (BATCH,), jnp.float32)
    cand_ctr = jax.random.uniform(k8, (BATCH,), jnp.float32)

    out = aw_user_encoder(params, hist_news_vector, cand_news_vector,
                          hist_av_idx, hist_epi_idx, cand_av_idx, cand_epi_idx,
                          cand_time_elapsed, cand_ctr)
    out = jax.block_until_ready(out)

    ref = aw_user_encoder_ref(params, hist_news_vector, cand_news_vector,
                              hist_av_idx, hist_epi_idx, cand_av_idx, cand_epi_idx,
                              cand_time_elapsed, cand_ctr)
    ref = jax.block_until_ready(ref)

    assert out.shape == (BATCH,)
    assert bool(jnp.all(jnp.isfinite(out)))
    np.testing.assert_allclose(np.asarray(out), np.asarray(ref), rtol=5e-2, atol=5e-2)
    print("KERNEL_OK")
</pallas_src>

<mosaic_0001>
module attributes {stable_mosaic.version = 11 : i64} {
  func.func @_aw_user_encoder_kernel(%arg0: memref<32x48xbf16, #tpu.memory_space<vmem>>, %arg1: memref<32x48xbf16, #tpu.memory_space<vmem>>, %arg2: memref<4x48xf32, #tpu.memory_space<vmem>>, %arg3: memref<32x32xf32, #tpu.memory_space<vmem>>, %arg4: memref<48x128xbf16, #tpu.memory_space<vmem>>, %arg5: memref<48x80xbf16, #tpu.memory_space<vmem>>, %arg6: memref<1x80xf32, #tpu.memory_space<vmem>>, %arg7: memref<32x96xbf16, #tpu.memory_space<vmem>>, %arg8: memref<1x96xf32, #tpu.memory_space<vmem>>, %arg9: memref<32x32xbf16, #tpu.memory_space<vmem>>, %arg10: memref<1x32xf32, #tpu.memory_space<vmem>>, %arg11: memref<32x48xbf16, #tpu.memory_space<vmem>>, %arg12: memref<32x48xbf16, #tpu.memory_space<vmem>>, %arg13: memref<1x48xf32, #tpu.memory_space<vmem>>, %arg14: memref<48x16xbf16, #tpu.memory_space<vmem>>, %arg15: memref<16x16xbf16, #tpu.memory_space<vmem>>, %arg16: memref<1x16xf32, #tpu.memory_space<vmem>>, %arg17: memref<1x16xf32, #tpu.memory_space<vmem>>, %arg18: memref<1x1xf32, #tpu.memory_space<vmem>>, %arg19: memref<4x1xf32, #tpu.memory_space<vmem>>) attributes {dimension_semantics = [], scalar_prefetch = 0 : i64, scratch_operands = 0 : i64, tpu.core_type = #tpu.core_type<tc>} {
    %c0 = arith.constant 0 : index
    %c0_0 = arith.constant 0 : index
    %0 = vector.load %arg0[%c0, %c0_0] : memref<32x48xbf16, #tpu.memory_space<vmem>>, vector<32x48xbf16>
    %c0_1 = arith.constant 0 : index
    %c0_2 = arith.constant 0 : index
    %1 = vector.load %arg4[%c0_1, %c0_2] : memref<48x128xbf16, #tpu.memory_space<vmem>>, vector<48x128xbf16>
    %cst = arith.constant dense<0.000000e+00> : vector<32x128xf32>
    %2 = tpu.matmul %0, %1, %cst {dimension_numbers = #tpu.dot_dimension_numbers<[1], [0], [0], [1], [0, 0, 1, 1], [], []>} : vector<32x48xbf16>, vector<48x128xbf16>, vector<32x128xf32> -> vector<32x128xf32>
    %c0_3 = arith.constant 0 : index
    %c0_4 = arith.constant 0 : index
    %3 = vector.load %arg1[%c0_3, %c0_4] : memref<32x48xbf16, #tpu.memory_space<vmem>>, vector<32x48xbf16>
    %c0_5 = arith.constant 0 : index
    %c0_6 = arith.constant 0 : index
    %4 = vector.load %arg5[%c0_5, %c0_6] : memref<48x80xbf16, #tpu.memory_space<vmem>>, vector<48x80xbf16>
    %cst_7 = arith.constant dense<0.000000e+00> : vector<32x80xf32>
    %5 = tpu.matmul %3, %4, %cst_7 {dimension_numbers = #tpu.dot_dimension_numbers<[1], [0], [0], [1], [0, 0, 1, 1], [], []>} : vector<32x48xbf16>, vector<48x80xbf16>, vector<32x80xf32> -> vector<32x80xf32>
    %c0_8 = arith.constant 0 : index
    %c0_9 = arith.constant 0 : index
    %6 = vector.load %arg6[%c0_8, %c0_9] : memref<1x80xf32, #tpu.memory_space<vmem>>, vector<1x80xf32>
    %7 = vector.broadcast %6 : vector<1x80xf32> to vector<32x80xf32>
    %8 = arith.addf %5, %7 : vector<32x80xf32>
    %9 = vector.extract_strided_slice %2 {offsets = [0, 0], sizes = [32, 32], strides = [1, 1]} : vector<32x128xf32> to vector<32x32xf32>
    %10 = vector.shape_cast %9 : vector<32x32xf32> to vector<8x4x32xf32>
    %11 = vector.extract_strided_slice %2 {offsets = [0, 32], sizes = [32, 32], strides = [1, 1]} : vector<32x128xf32> to vector<32x32xf32>
    %12 = vector.shape_cast %11 : vector<32x32xf32> to vector<8x4x32xf32>
    %13 = vector.extract_strided_slice %2 {offsets = [0, 64], sizes = [32, 32], strides = [1, 1]} : vector<32x128xf32> to vector<32x32xf32>
    %14 = vector.shape_cast %13 : vector<32x32xf32> to vector<8x4x32xf32>
    %15 = vector.extract_strided_slice %12 {offsets = [7, 0, 0], sizes = [1, 4, 32], strides = [1, 1, 1]} : vector<8x4x32xf32> to vector<1x4x32xf32>
    %16 = vector.extract_strided_slice %12 {offsets = [0, 0, 0], sizes = [7, 4, 32], strides = [1, 1, 1]} : vector<8x4x32xf32> to vector<7x4x32xf32>
    %17 = tpu.concatenate %15, %16 in 0 : vector<1x4x32xf32>, vector<7x4x32xf32> -> vector<8x4x32xf32>
    %18 = vector.extract_strided_slice %14 {offsets = [1, 0, 0], sizes = [7, 4, 32], strides = [1, 1, 1]} : vector<8x4x32xf32> to vector<7x4x32xf32>
    %19 = vector.extract_strided_slice %14 {offsets = [0, 0, 0], sizes = [1, 4, 32], strides = [1, 1, 1]} : vector<8x4x32xf32> to vector<1x4x32xf32>
    %20 = tpu.concatenate %18, %19 in 0 : vector<7x4x32xf32>, vector<1x4x32xf32> -> vector<8x4x32xf32>
    %21 = arith.addf %10, %17 : vector<8x4x32xf32>
    %22 = arith.addf %21, %20 : vector<8x4x32xf32>
    %23 = vector.shape_cast %22 : vector<8x4x32xf32> to vector<32x32xf32>
    %24 = vector.extract_strided_slice %8 {offsets = [0, 0], sizes = [32, 32], strides = [1, 1]} : vector<32x80xf32> to vector<32x32xf32>
    %25 = arith.addf %23, %24 : vector<32x32xf32>
    %26 = vector.extract_strided_slice %2 {offsets = [0, 96], sizes = [32, 32], strides = [1, 1]} : vector<32x128xf32> to vector<32x32xf32>
    %27 = vector.extract_strided_slice %8 {offsets = [0, 32], sizes = [32, 32], strides = [1, 1]} : vector<32x80xf32> to vector<32x32xf32>
    %28 = arith.addf %26, %27 : vector<32x32xf32>
    %29 = arith.truncf %28 : vector<32x32xf32> to vector<32x32xbf16>
    %c0_10 = arith.constant 0 : index
    %c0_11 = arith.constant 0 : index
    %30 = vector.load %arg7[%c0_10, %c0_11] : memref<32x96xbf16, #tpu.memory_space<vmem>>, vector<32x96xbf16>
    %cst_12 = arith.constant dense<0.000000e+00> : vector<32x96xf32>
    %31 = tpu.matmul %29, %30, %cst_12 {dimension_numbers = #tpu.dot_dimension_numbers<[1], [0], [0], [1], [0, 0, 1, 1], [], []>} : vector<32x32xbf16>, vector<32x96xbf16>, vector<32x96xf32> -> vector<32x96xf32>
    %c0_13 = arith.constant 0 : index
    %c0_14 = arith.constant 0 : index
    %32 = vector.load %arg8[%c0_13, %c0_14] : memref<1x96xf32, #tpu.memory_space<vmem>>, vector<1x96xf32>
    %33 = vector.broadcast %32 : vector<1x96xf32> to vector<32x96xf32>
    %34 = arith.addf %31, %33 : vector<32x96xf32>
    %c0_15 = arith.constant 0 : index
    %c0_16 = arith.constant 0 : index
    %35 = vector.load %arg3[%c0_15, %c0_16] : memref<32x32xf32, #tpu.memory_space<vmem>>, vector<32x32xf32>
    %36 = vector.extract_strided_slice %34 {offsets = [0, 0], sizes = [32, 16], strides = [1, 1]} : vector<32x96xf32> to vector<32x16xf32>
    %cst_17 = arith.constant 2.500000e-01 : f32
    %37 = vector.broadcast %cst_17 : f32 to vector<32x16xf32>
    %38 = arith.mulf %36, %37 : vector<32x16xf32>
    %39 = arith.truncf %38 : vector<32x16xf32> to vector<32x16xbf16>
    %40 = vector.extract_strided_slice %34 {offsets = [0, 32], sizes = [32, 16], strides = [1, 1]} : vector<32x96xf32> to vector<32x16xf32>
    %41 = arith.truncf %40 : vector<32x16xf32> to vector<32x16xbf16>
    %42 = vector.extract_strided_slice %34 {offsets = [0, 64], sizes = [32, 16], strides = [1, 1]} : vector<32x96xf32> to vector<32x16xf32>
    %43 = arith.truncf %42 : vector<32x16xf32> to vector<32x16xbf16>
    %cst_18 = arith.constant dense<0.000000e+00> : vector<32x32xf32>
    %44 = tpu.matmul %39, %41, %cst_18 {dimension_numbers = #tpu.dot_dimension_numbers<[1], [1], [0], [0], [0, 0, 1, 0], [], []>} : vector<32x16xbf16>, vector<32x16xbf16>, vector<32x32xf32> -> vector<32x32xf32>
    %45 = arith.addf %44, %35 : vector<32x32xf32>
    %cst_19 = arith.constant dense<0xFF800000> : vector<32xf32>
    %46 = vector.multi_reduction <maximumf>, %45, %cst_19 [1] : vector<32x32xf32> to vector<32xf32>
    %47 = vector.shape_cast %46 : vector<32xf32> to vector<32x1xf32>
    %48 = vector.broadcast %47 : vector<32x1xf32> to vector<32x32xf32>
    %49 = arith.subf %45, %48 : vector<32x32xf32>
    %50 = math.exp %49 : vector<32x32xf32>
    %cst_20 = arith.constant dense<0.000000e+00> : vector<32xf32>
    %51 = vector.multi_reduction <add>, %50, %cst_20 [1] : vector<32x32xf32> to vector<32xf32>
    %52 = vector.shape_cast %51 : vector<32xf32> to vector<32x1xf32>
    %53 = tpu.reciprocal %52 {approx = true} : vector<32x1xf32> -> vector<32x1xf32>
    %54 = vector.broadcast %53 : vector<32x1xf32> to vector<32x32xf32>
    %55 = arith.mulf %50, %54 : vector<32x32xf32>
    %56 = arith.truncf %55 : vector<32x32xf32> to vector<32x32xbf16>
    %cst_21 = arith.constant dense<0.000000e+00> : vector<32x16xf32>
    %57 = tpu.matmul %56, %43, %cst_21 {dimension_numbers = #tpu.dot_dimension_numbers<[1], [0], [0], [1], [0, 0, 1, 1], [], []>} : vector<32x32xbf16>, vector<32x16xbf16>, vector<32x16xf32> -> vector<32x16xf32>
    %58 = arith.truncf %57 : vector<32x16xf32> to vector<32x16xbf16>
    %c0_22 = arith.constant 0 : index
    %c0_23 = arith.constant 0 : index
    %59 = vector.load %arg9[%c0_22, %c0_23] : memref<32x32xbf16, #tpu.memory_space<vmem>>, vector<16x32xbf16>
    %cst_24 = arith.constant dense<0.000000e+00> : vector<32x32xf32>
    %60 = tpu.matmul %58, %59, %cst_24 {dimension_numbers = #tpu.dot_dimension_numbers<[1], [0], [0], [1], [0, 0, 1, 1], [], []>} : vector<32x16xbf16>, vector<16x32xbf16>, vector<32x32xf32> -> vector<32x32xf32>
    %61 = vector.extract_strided_slice %34 {offsets = [0, 16], sizes = [32, 16], strides = [1, 1]} : vector<32x96xf32> to vector<32x16xf32>
    %cst_25 = arith.constant 2.500000e-01 : f32
    %62 = vector.broadcast %cst_25 : f32 to vector<32x16xf32>
    %63 = arith.mulf %61, %62 : vector<32x16xf32>
    %64 = arith.truncf %63 : vector<32x16xf32> to vector<32x16xbf16>
    %65 = vector.extract_strided_slice %34 {offsets = [0, 48], sizes = [32, 16], strides = [1, 1]} : vector<32x96xf32> to vector<32x16xf32>
    %66 = arith.truncf %65 : vector<32x16xf32> to vector<32x16xbf16>
    %67 = vector.extract_strided_slice %34 {offsets = [0, 80], sizes = [32, 16], strides = [1, 1]} : vector<32x96xf32> to vector<32x16xf32>
    %68 = arith.truncf %67 : vector<32x16xf32> to vector<32x16xbf16>
    %cst_26 = arith.constant dense<0.000000e+00> : vector<32x32xf32>
    %69 = tpu.matmul %64, %66, %cst_26 {dimension_numbers = #tpu.dot_dimension_numbers<[1], [1], [0], [0], [0, 0, 1, 0], [], []>} : vector<32x16xbf16>, vector<32x16xbf16>, vector<32x32xf32> -> vector<32x32xf32>
    %70 = arith.addf %69, %35 : vector<32x32xf32>
    %cst_27 = arith.constant dense<0xFF800000> : vector<32xf32>
    %71 = vector.multi_reduction <maximumf>, %70, %cst_27 [1] : vector<32x32xf32> to vector<32xf32>
    %72 = vector.shape_cast %71 : vector<32xf32> to vector<32x1xf32>
    %73 = vector.broadcast %72 : vector<32x1xf32> to vector<32x32xf32>
    %74 = arith.subf %70, %73 : vector<32x32xf32>
    %75 = math.exp %74 : vector<32x32xf32>
    %cst_28 = arith.constant dense<0.000000e+00> : vector<32xf32>
    %76 = vector.multi_reduction <add>, %75, %cst_28 [1] : vector<32x32xf32> to vector<32xf32>
    %77 = vector.shape_cast %76 : vector<32xf32> to vector<32x1xf32>
    %78 = tpu.reciprocal %77 {approx = true} : vector<32x1xf32> -> vector<32x1xf32>
    %79 = vector.broadcast %78 : vector<32x1xf32> to vector<32x32xf32>
    %80 = arith.mulf %75, %79 : vector<32x32xf32>
    %81 = arith.truncf %80 : vector<32x32xf32> to vector<32x32xbf16>
    %cst_29 = arith.constant dense<0.000000e+00> : vector<32x16xf32>
    %82 = tpu.matmul %81, %68, %cst_29 {dimension_numbers = #tpu.dot_dimension_numbers<[1], [0], [0], [1], [0, 0, 1, 1], [], []>} : vector<32x32xbf16>, vector<32x16xbf16>, vector<32x16xf32> -> vector<32x16xf32>
    %83 = arith.truncf %82 : vector<32x16xf32> to vector<32x16xbf16>
    %c16 = arith.constant 16 : index
    %c0_30 = arith.constant 0 : index
    %84 = vector.load %arg9[%c16, %c0_30] : memref<32x32xbf16, #tpu.memory_space<vmem>>, vector<16x32xbf16>
    %cst_31 = arith.constant dense<0.000000e+00> : vector<32x32xf32>
    %85 = tpu.matmul %83, %84, %cst_31 {dimension_numbers = #tpu.dot_dimension_numbers<[1], [0], [0], [1], [0, 0, 1, 1], [], []>} : vector<32x16xbf16>, vector<16x32xbf16>, vector<32x32xf32> -> vector<32x32xf32>
    %86 = arith.addf %60, %85 : vector<32x32xf32>
    %c0_32 = arith.constant 0 : index
    %c0_33 = arith.constant 0 : index
    %87 = vector.load %arg10[%c0_32, %c0_33] : memref<1x32xf32, #tpu.memory_space<vmem>>, vector<1x32xf32>
    %88 = vector.broadcast %87 : vector<1x32xf32> to vector<32x32xf32>
    %89 = arith.addf %86, %88 : vector<32x32xf32>
    %90 = arith.truncf %25 : vector<32x32xf32> to vector<32x32xbf16>
    %c0_34 = arith.constant 0 : index
    %c0_35 = arith.constant 0 : index
    %91 = vector.load %arg11[%c0_34, %c0_35] : memref<32x48xbf16, #tpu.memory_space<vmem>>, vector<32x48xbf16>
    %cst_36 = arith.constant dense<0.000000e+00> : vector<32x48xf32>
    %92 = tpu.matmul %90, %91, %cst_36 {dimension_numbers = #tpu.dot_dimension_numbers<[1], [0], [0], [1], [0, 0, 1, 1], [], []>} : vector<32x32xbf16>, vector<32x48xbf16>, vector<32x48xf32> -> vector<32x48xf32>
    %93 = arith.truncf %89 : vector<32x32xf32> to vector<32x32xbf16>
    %c0_37 = arith.constant 0 : index
    %c0_38 = arith.constant 0 : index
    %94 = vector.load %arg12[%c0_37, %c0_38] : memref<32x48xbf16, #tpu.memory_space<vmem>>, vector<32x48xbf16>
    %cst_39 = arith.constant dense<0.000000e+00> : vector<32x48xf32>
    %95 = tpu.matmul %93, %94, %cst_39 {dimension_numbers = #tpu.dot_dimension_numbers<[1], [0], [0], [1], [0, 0, 1, 1], [], []>} : vector<32x32xbf16>, vector<32x48xbf16>, vector<32x48xf32> -> vector<32x48xf32>
    %96 = arith.addf %92, %95 : vector<32x48xf32>
    %c0_40 = arith.constant 0 : index
    %c0_41 = arith.constant 0 : index
    %97 = vector.load %arg13[%c0_40, %c0_41] : memref<1x48xf32, #tpu.memory_space<vmem>>, vector<1x48xf32>
    %98 = vector.broadcast %97 : vector<1x48xf32> to vector<32x48xf32>
    %99 = arith.addf %96, %98 : vector<32x48xf32>
    %100 = arith.truncf %99 : vector<32x48xf32> to vector<32x48xbf16>
    %c0_42 = arith.constant 0 : index
    %c0_43 = arith.constant 0 : index
    %101 = vector.load %arg14[%c0_42, %c0_43] : memref<48x16xbf16, #tpu.memory_space<vmem>>, vector<48x16xbf16>
    %cst_44 = arith.constant dense<0.000000e+00> : vector<32x16xf32>
    %102 = tpu.matmul %100, %101, %cst_44 {dimension_numbers = #tpu.dot_dimension_numbers<[1], [0], [0], [1], [0, 0, 1, 1], [], []>} : vector<32x48xbf16>, vector<48x16xbf16>, vector<32x16xf32> -> vector<32x16xf32>
    %103 = vector.extract_strided_slice %8 {offsets = [0, 64], sizes = [32, 16], strides = [1, 1]} : vector<32x80xf32> to vector<32x16xf32>
    %104 = arith.addf %102, %103 : vector<32x16xf32>
    %105 = math.tanh %104 : vector<32x16xf32>
    %106 = arith.truncf %105 : vector<32x16xf32> to vector<32x16xbf16>
    %c0_45 = arith.constant 0 : index
    %c0_46 = arith.constant 0 : index
    %107 = vector.load %arg15[%c0_45, %c0_46] : memref<16x16xbf16, #tpu.memory_space<vmem>>, vector<16x16xbf16>
    %cst_47 = arith.constant dense<0.000000e+00> : vector<32x16xf32>
    %108 = tpu.matmul %106, %107, %cst_47 {dimension_numbers = #tpu.dot_dimension_numbers<[1], [0], [0], [1], [0, 0, 1, 1], [], []>} : vector<32x16xbf16>, vector<16x16xbf16>, vector<32x16xf32> -> vector<32x16xf32>
    %c0_48 = arith.constant 0 : index
    %c0_49 = arith.constant 0 : index
    %109 = vector.load %arg16[%c0_48, %c0_49] : memref<1x16xf32, #tpu.memory_space<vmem>>, vector<1x16xf32>
    %110 = vector.broadcast %109 : vector<1x16xf32> to vector<32x16xf32>
    %111 = arith.addf %108, %110 : vector<32x16xf32>
    %112 = math.tanh %111 : vector<32x16xf32>
    %113 = vector.shape_cast %112 : vector<32x16xf32> to vector<8x4x16xf32>
    %c0_50 = arith.constant 0 : index
    %c0_51 = arith.constant 0 : index
    %114 = vector.load %arg17[%c0_50, %c0_51] : memref<1x16xf32, #tpu.memory_space<vmem>>, vector<1x16xf32>
    %115 = vector.shape_cast %114 : vector<1x16xf32> to vector<1x1x16xf32>
    %116 = vector.broadcast %115 : vector<1x1x16xf32> to vector<8x4x16xf32>
    %117 = arith.mulf %113, %116 : vector<8x4x16xf32>
    %cst_52 = arith.constant dense<0.000000e+00> : vector<8x4xf32>
    %118 = vector.multi_reduction <add>, %117, %cst_52 [2] : vector<8x4x16xf32> to vector<8x4xf32>
    %119 = vector.shape_cast %118 : vector<8x4xf32> to vector<8x4x1xf32>
    %c0_53 = arith.constant 0 : index
    %c0_54 = arith.constant 0 : index
    %120 = vector.load %arg18[%c0_53, %c0_54] : memref<1x1xf32, #tpu.memory_space<vmem>>, vector<1x1xf32>
    %121 = vector.shape_cast %120 : vector<1x1xf32> to vector<1x1x1xf32>
    %122 = vector.broadcast %121 : vector<1x1x1xf32> to vector<8x4x1xf32>
    %123 = arith.addf %119, %122 : vector<8x4x1xf32>
    %cst_55 = arith.constant dense<0xFF800000> : vector<4x1xf32>
    %124 = vector.multi_reduction <maximumf>, %123, %cst_55 [0] : vector<8x4x1xf32> to vector<4x1xf32>
    %125 = vector.shape_cast %124 : vector<4x1xf32> to vector<1x4x1xf32>
    %126 = vector.broadcast %125 : vector<1x4x1xf32> to vector<8x4x1xf32>
    %127 = arith.subf %123, %126 : vector<8x4x1xf32>
    %128 = math.exp %127 : vector<8x4x1xf32>
    %cst_56 = arith.constant dense<0.000000e+00> : vector<4x1xf32>
    %129 = vector.multi_reduction <add>, %128, %cst_56 [0] : vector<8x4x1xf32> to vector<4x1xf32>
    %130 = vector.shape_cast %129 : vector<4x1xf32> to vector<1x4x1xf32>
    %131 = tpu.reciprocal %130 {approx = true} : vector<1x4x1xf32> -> vector<1x4x1xf32>
    %132 = vector.broadcast %131 : vector<1x4x1xf32> to vector<8x4x1xf32>
    %133 = arith.mulf %128, %132 : vector<8x4x1xf32>
    %134 = vector.shape_cast %99 : vector<32x48xf32> to vector<8x4x48xf32>
    %135 = vector.broadcast %133 : vector<8x4x1xf32> to vector<8x4x48xf32>
    %136 = arith.mulf %135, %134 : vector<8x4x48xf32>
    %cst_57 = arith.constant dense<0.000000e+00> : vector<4x48xf32>
    %137 = vector.multi_reduction <add>, %136, %cst_57 [0] : vector<8x4x48xf32> to vector<4x48xf32>
    %c0_58 = arith.constant 0 : index
    %c0_59 = arith.constant 0 : index
    %138 = vector.load %arg2[%c0_58, %c0_59] : memref<4x48xf32, #tpu.memory_space<vmem>>, vector<4x48xf32>
    %139 = arith.mulf %138, %137 : vector<4x48xf32>
    %cst_60 = arith.constant dense<0.000000e+00> : vector<4xf32>
    %140 = vector.multi_reduction <add>, %139, %cst_60 [1] : vector<4x48xf32> to vector<4xf32>
    %141 = vector.shape_cast %140 : vector<4xf32> to vector<4x1xf32>
    %c0_61 = arith.constant 0 : index
    %c0_62 = arith.constant 0 : index
    %142 = vector.load %arg19[%c0_61, %c0_62] : memref<4x1xf32, #tpu.memory_space<vmem>>, vector<4x1xf32>
    tpu.vector_store %arg19[%c0_61, %c0_62], %141 {strides = array<i32>} : memref<4x1xf32, #tpu.memory_space<vmem>>, vector<4x1xf32>,
    return
  }
}

</mosaic_0001>

<bundles_post_ra>
// kernel: aw_user_encoder.1
= control target key start
LH: loop header
LB: loop body
LE: loop exit
PB: predicated region body
PF: predicated region fallthrough
CT: control target
= control target key end

     0   :  { %vm103_vm0 = vcmask 392192   ;;  %s1340_s25 = smov 64   ;;  %vm336_vm1 = vcmask 261120   ;;  %s1343_s30 = smov 96   ;;  %vm380_vm2 = vcmask 130048   ;;  %vm932_vm3 = vcmask 125952   ;;  %s1806_s5 = inlined_call_operand.vmem [shape: bf16[48,80], index: 5, kind: input, shape index: {}]   ;;  %s1807_s4 = inlined_call_operand.vmem [shape: bf16[48,128], index: 4, kind: input, shape index: {}]   ;;  %s1808_s6 = inlined_call_operand.vmem [shape: f32[1,80], index: 6, kind: input, shape index: {}]   ;;  %s1809_s1 = inlined_call_operand.vmem [shape: bf16[32,48], index: 1, kind: input, shape index: {}]   ;;  %s1810_s0 = inlined_call_operand.vmem [shape: bf16[32,48], index: 0, kind: input, shape index: {}]   ;;  %s1811_s8 = inlined_call_operand.vmem [shape: f32[1,96], index: 8, kind: input, shape index: {}]   ;;  %s1812_s7 = inlined_call_operand.vmem [shape: bf16[32,96], index: 7, kind: input, shape index: {}]   ;;  %s1813_s3 = inlined_call_operand.vmem [shape: f32[32,32], index: 3, kind: input, shape index: {}]   ;;  %s1814_s11 = inlined_call_operand.vmem [shape: bf16[32,48], index: 11, kind: input, shape index: {}]   ;;  %s1815_s9 = inlined_call_operand.vmem [shape: bf16[32,32], index: 9, kind: input, shape index: {}]   ;;  %s1816_s10 = inlined_call_operand.vmem [shape: f32[1,32], index: 10, kind: input, shape index: {}]   ;;  %s1817_s13 = inlined_call_operand.vmem [shape: f32[1,48], index: 13, kind: input, shape index: {}]   ;;  %s1818_s12 = inlined_call_operand.vmem [shape: bf16[32,48], index: 12, kind: input, shape index: {}]   ;;  %s1819_s14 = inlined_call_operand.vmem [shape: bf16[48,16], index: 14, kind: input, shape index: {}]   ;;  %s1820_s16 = inlined_call_operand.vmem [shape: f32[1,16], index: 16, kind: input, shape index: {}]   ;;  %s1821_s15 = inlined_call_operand.vmem [shape: bf16[16,16], index: 15, kind: input, shape index: {}]   ;;  %s1822_s17 = inlined_call_operand.vmem [shape: f32[1,16], index: 17, kind: input, shape index: {}]   ;;  %s1823_s18 = inlined_call_operand.<no memory space> [shape: f32[1,1], index: 18, kind: input, shape index: {}]   ;;  %s1824_s2 = inlined_call_operand.vmem [shape: f32[4,48], index: 2, kind: input, shape index: {}]   ;;  %s1825_s19 = inlined_call_operand.vmem [shape: f32[4,1], index: 19, kind: output, shape index: {}]  }
   0x1   :  { %1829 = sst [smem:[#allocation3_spill]] %s1806_s5  ;;  %v1233_v7 = vld [vmem:[%s1810_s0] sm:$0xff]  ;;  %v1234_v9 = vld [vmem:[%s1810_s0 + $0x8] sm:$0xff]  ;;  %s1345_s0 = smov 48   ;;  %vm969_vm4 = vcmask 3072   ;;  %vm1093_vm5 = vcmask 388096  }
   0x2   :  { %1830 = sst [smem:[#allocation4_spill]] %s1807_s4  ;;  %v1244_v21 = vld [vmem:[%s1812_s7 + $0x8] sm:$0xff]  ;;  %v1243_v22 = vld [vmem:[%s1812_s7] sm:$0xff]  ;;  %s1341_s7 = smov 32  }
   0x3   :  { %1831 = sst [smem:[#allocation5_spill]] %s1808_s6  ;;  %1255 = vmatpush.bf16.msra.mxu2 %v1244_v21  ;;  %v1268_v39 = vld [vmem:[%s1811_s8] ss:$0 sm:$0xff]  ;;  %s1344_s8 = smov 112  }
   0x4   :  { %1832 = sst [smem:[#allocation6_spill]] %s1809_s1 }
   0x5   :  { %1833 = sst [smem:[#allocation7_spill]] %s1820_s16 }
   0x6   :  { %s1834_s20 = sld [smem:[#allocation3_spill]] }
   0x7   :  { %s1835_s16 = sld [smem:[#allocation4_spill]]  ;;  %1256 = vmatpush.bf16.msra.mxu2 %v1243_v22 }
   0x8   :  { %s1836_s5 = sld [smem:[#allocation6_spill]] }
   0x9   :  { %s1837_s24 = sld [smem:[#allocation5_spill]] }
   0xc   :  { %v1242_v0 = vld [vmem:[%s1834_s20 + $0x10] sm:$0xff]  ;;  %v1241_v2 = vld [vmem:[%s1834_s20 + $0x8] sm:$0xff]  ;;  %v1240_v4 = vld [vmem:[%s1834_s20] sm:$0xff] }
   0xd   :  { %v1237_v1 = vld [vmem:[%s1835_s16 + $0x10] sm:$0xff]  ;;  %182 = vmatpush.bf16.msra.mxu1 %v1242_v0  ;;  %v1236_v3 = vld [vmem:[%s1835_s16 + $0x8] sm:$0xff]  ;;  %v1235_v5 = vld [vmem:[%s1835_s16] sm:$0xff] }
   0xe   :  { %115 = vmatpush.bf16.msra.mxu0 %v1237_v1  ;;  %v1238_v6 = vld [vmem:[%s1836_s5] sm:$0xff]  ;;  %v1239_v8 = vld [vmem:[%s1836_s5 + $0x8] sm:$0xff]  ;;  %s1342_s5 = smov 80  }
   0xf   :  { %v1267_v10 = vld [vmem:[%s1837_s24] ss:$0 sm:$0xff] }
  0x10   :  { %v362_v1 = vld [vmem:[%s1813_s3] sm:$0xff] }
  0x11   :  { %183 = vmatpush.bf16.msra.mxu1 %v1241_v2 }
  0x12   :  { %116 = vmatpush.bf16.msra.mxu0 %v1236_v3 }
  0x15   :  { %184 = vmatpush.bf16.msra.mxu1 %v1240_v4 }
  0x16   :  { %117 = vmatpush.bf16.msra.mxu0 %v1235_v5 }
  0x18   :  { %1161 = vmatmul.msk.bf16.vlgmr.msra.gmra.mxu1 %vm103_vm0, %v1238_v6 }
  0x19   :  { %1139 = vmatmul.msk.bf16.vlgmr.msra.gmra.mxu0 %vm103_vm0, %v1233_v7  ;;  %v363_v7 = vld [vmem:[%s1813_s3 + $0x8] sm:$0xff] }
  0x1a   :  { %349 = vmatpush.bf16.msrb.mxu0 %v1244_v21 }
  0x1e   :  { %350 = vmatpush.bf16.msrb.mxu0 %v1243_v22 }
  0x28   :  { %1162 = vmatmul.msk.bf16.gmra.mxu1 %vm103_vm0, %v1239_v8 }
  0x29   :  { %1140 = vmatmul.msk.bf16.gmra.mxu0 %vm103_vm0, %v1234_v9 }
  0x95   :  { %v186_v11 = vpop.f32.mrf.mxu1 }
  0x96   :  { %v1484_v12 = vadd.f32 %v1267_v10, %v186_v11  ;;  %v1500_v19 = vpop.f32.mrf.mxu0 }
  0x98   :  { %292 = vrot.lane.b32.xlu1 %v1484_v12, %s1340_s25 }
  0x9d   :  { %v188_v13 = vpop.f32.mrf.mxu1 }
  0x9e   :  { %v1488_v14 = vadd.f32 %v1267_v10, %v188_v13  ;;  %v1502_v20 = vpop.f32.mrf.mxu0 }
  0xa0   :  { %294 = vrot.lane.b32.xlu1 %v1488_v14, %s1340_s25 }
  0xa5   :  { %v191_v15 = vpop.f32.mrf.mxu1 }
  0xa6   :  { %v1492_v16 = vadd.f32 %v1267_v10, %v191_v15  ;;  %v1510_v23 = vpop.f32.mrf.mxu0 }
  0xa8   :  { %296 = vrot.lane.b32.xlu0 %v1492_v16, %s1340_s25 }
  0xad   :  { %v193_v17 = vpop.f32.mrf.mxu1 }
  0xae   :  { %v1496_v18 = vadd.f32 %v1267_v10, %v193_v17  ;;  %v1516_v26 = vpop.f32.mrf.mxu0  ;;  %v364_v17 = vld [vmem:[%s1813_s3 + $0x10] sm:$0xff] }
  0xb0   :  { %298 = vrot.lane.b32.xlu0 %v1496_v18, %s1340_s25 }
 0x10a   :  { %v1514_v25 = vpop.permute.xlu1 %292 }
 0x10b   :  { %v304_v33 = vadd.f32 %v1514_v25, %v1500_v19 }
 0x112   :  { %v1524_v31 = vpop.permute.xlu1 %294 }
 0x113   :  { %v305_v32 = vadd.f32 %v1524_v31, %v1502_v20 }
 0x115   :  { %v308_v34 = vpack.c.bf16 %v305_v32, %v304_v33 }
 0x11a   :  { %v1512_v24 = vpop.permute.xlu0 %296 }
 0x11b   :  { %v306_v28 = vadd.f32 %v1512_v24, %v1510_v23 }
 0x122   :  { %v1518_v27 = vpop.permute.xlu0 %298 }
 0x123   :  { %v307_v29 = vadd.f32 %v1518_v27, %v1516_v26 }
 0x125   :  { %v309_v30 = vpack.c.bf16 %v307_v29, %v306_v28 }
 0x127   :  { %322 = vrot.lane.b32.xlu2 %v309_v30, %s1341_s7 }
 0x12f   :  { %320 = vrot.lane.b32.xlu2 %v308_v34, %s1341_s7  ;;  %v365_v34 = vld [vmem:[%s1813_s3 + $0x18] sm:$0xff] }
 0x181   :  { %v323_v35 = vpop.permute.xlu2 %322 }
 0x182   :  { %1172 = vmatmul.msk.bf16.vlgmr.msra.gmra.mxu2 %vm336_vm1, %v323_v35 }
 0x189   :  { %v321_v36 = vpop.permute.xlu2 %320 }
 0x18a   :  { %1171 = vmatmul.msk.bf16.vlgmr.msrb.gmra.mxu0 %vm336_vm1, %v321_v36 }
 0x205   :  { %v357_v37 = vpop.f32.mrf.mxu2 }
 0x206   :  { %v358_v41 = vadd.f32 %v1268_v39, %v357_v37 }
 0x207   :  { %v352_v38 = vpop.f32.mrf.mxu0 }
 0x208   :  { %v353_v44 = vadd.f32 %v1268_v39, %v352_v38  ;;  %v368_v49 = vmul.f32 0.25, %v358_v41 }
 0x20a   :  { %v366_v51 = vmul.f32 0.25, %v353_v44 }
 0x20d   :  { %v359_v40 = vpop.f32.mrf.mxu2 }
 0x20e   :  { %v360_v42 = vadd.f32 %v1268_v39, %v359_v40 }
 0x20f   :  { %v354_v43 = vpop.f32.mrf.mxu0 }
 0x210   :  { %v1535_v45 = vpack.c.bf16 %v360_v42, %v358_v41  ;;  %v355_v46 = vadd.f32 %v1268_v39, %v354_v43  ;;  %v369_v48 = vmul.f32 0.25, %v360_v42 }
 0x212   :  { %v1537_v47 = vpack.c.bf16 %v355_v46, %v353_v44  ;;  %501 = vrot.lane.b32.xlu2 %v1535_v45, %s1342_s5  ;;  %378 = vrot.lane.b32.xlu0 %v1535_v45, %s1343_s30  ;;  %v367_v50 = vmul.f32 0.25, %v355_v46  ;;  %v371_v52 = vpack.c.bf16 %v369_v48, %v368_v49 }
 0x214   :  { %376 = vrot.lane.b32.xlu1 %v1537_v47, %s1343_s30  ;;  %v370_v53 = vpack.c.bf16 %v367_v50, %v366_v51 }
 0x21a   :  { %497 = vrot.lane.b32.xlu2 %v371_v52, %s1344_s8  ;;  %499 = vrot.lane.b32.xlu0 %v1537_v47, %s1342_s5 }
 0x21c   :  { %495 = vrot.lane.b32.xlu1 %v370_v53, %s1344_s8 }
 0x222   :  { %460 = vrot.lane.b32.xlu0 %v1535_v45, %s1340_s25 }
 0x26c   :  { %v502_v54 = vpop.permute.xlu2 %501 }
 0x26d   :  { %v513_v55 = vsel %vm380_vm2, %v502_v54, 0 }
 0x26e   :  { %521 = vmatpush.bf16.xpose.msra.mxu0 %v513_v55 }
 0x274   :  { %v498_v0 = vpop.permute.xlu2 %497 }
 0x284   :  { %v379_v56 = vpop.permute.xlu0 %378 }
 0x285   :  { %v391_v57 = vsel %vm380_vm2, %v379_v56, 0 }
 0x286   :  { %399 = vmatpush.bf16.xpose.msra.mxu3 %v391_v57  ;;  %v377_v58 = vpop.permute.xlu1 %376 }
 0x287   :  { %v388_v61 = vsel %vm380_vm2, %v377_v58, 0 }
 0x28c   :  { %v500_v59 = vpop.permute.xlu0 %499 }
 0x28d   :  { %v510_v60 = vsel %vm380_vm2, %v500_v59, 0 }
 0x28e   :  { %400 = vmatpush.bf16.xpose.msra.mxu3 %v388_v61  ;;  %522 = vmatpush.bf16.xpose.msra.mxu0 %v510_v60  ;;  %v496_v63 = vpop.permute.xlu1 %495 }
 0x294   :  { %v461_v62 = vpop.permute.xlu0 %460 }
 0x295   :  { %1173 = vmatmul.msk.bf16.vlgmr.msra.gmra.mxu3 %vm380_vm2, %v370_v53  ;;  %476 = vmatpush.bf16.msrb.mxu2 %v461_v62 }
 0x296   :  { %1177 = vmatmul.msk.bf16.vlgmr.msra.gmra.mxu0 %vm380_vm2, %v496_v63 }
 0x2a5   :  { %1174 = vmatmul.msk.bf16.gmra.mxu3 %vm380_vm2, %v371_v52 }
 0x2a6   :  { %1178 = vmatmul.msk.bf16.gmra.mxu0 %vm380_vm2, %v498_v0 }
 0x313   :  { %v524_v2 = vpop.f32.mrf.mxu0 }
 0x314   :  { %v525_v3 = vadd.f32 %v524_v2, %v362_v1 }
 0x316   :  { %v534_v4 = vsel %vm336_vm1, %v525_v3, -inf }
 0x317   :  { %535 = vmax.xlane.f32.xlu2 %v534_v4 }
 0x318   :  { %v402_v5 = vpop.f32.mrf.mxu3 }
 0x319   :  { %v403_v6 = vadd.f32 %v402_v5, %v362_v1 }
 0x31b   :  { %v526_v8 = vpop.f32.mrf.mxu0  ;;  %v412_v9 = vsel %vm336_vm1, %v403_v6, -inf }
 0x31c   :  { %v527_v10 = vadd.f32 %v526_v8, %v363_v7  ;;  %413 = vmax.xlane.f32.xlu0 %v412_v9 }
 0x31e   :  { %v537_v11 = vsel %vm336_vm1, %v527_v10, -inf }
 0x31f   :  { %538 = vmax.xlane.f32.xlu2 %v537_v11 }
 0x320   :  { %v404_v13 = vpop.f32.mrf.mxu3 }
 0x321   :  { %v405_v15 = vadd.f32 %v404_v13, %v363_v7 }
 0x323   :  { %v529_v21 = vpop.f32.mrf.mxu0  ;;  %v415_v22 = vsel %vm336_vm1, %v405_v15, -inf }
 0x324   :  { %v1568_v28 = vadd.f32 %v529_v21, %v364_v17  ;;  %416 = vmax.xlane.f32.xlu1 %v415_v22 }
 0x326   :  { %v540_v29 = vsel %vm336_vm1, %v1568_v28, -inf }
 0x327   :  { %541 = vmax.xlane.f32.xlu2 %v540_v29  ;;  %v1626_v29 = vrot.slane %v1510_v23, 4 }
 0x328   :  { %v407_v30 = vpop.f32.mrf.mxu3 }
 0x329   :  { %v408_v32 = vadd.f32 %v407_v30, %v364_v17  ;;  %v1614_v17 = vrot.slane %v1502_v20, 4  ;;  %v1633_v30 = vrot.slane %v1516_v26, 4 }
 0x32b   :  { %v418_v33 = vsel %vm336_vm1, %v408_v32, -inf  ;;  %v531_v35 = vpop.f32.mrf.mxu0 }
 0x32c   :  { %419 = vmax.xlane.f32.xlu0 %v418_v33  ;;  %v532_v36 = vadd.f32 %v531_v35, %v365_v34 }
 0x32e   :  { %v543_v40 = vsel %vm336_vm1, %v532_v36, -inf }
 0x330   :  { %v409_v37 = vpop.f32.mrf.mxu3 }
 0x331   :  { %v410_v38 = vadd.f32 %v409_v37, %v365_v34 }
 0x333   :  { %v421_v39 = vsel %vm336_vm1, %v410_v38, -inf }
 0x334   :  { %422 = vmax.xlane.f32.xlu1 %v421_v39  ;;  %544 = vmax.xlane.f32.xlu0 %v543_v40 }
 0x348   :  { %580 = vrot.lane.b32.xlu0 %v1537_v47, %s1345_s0 }
 0x38a   :  { %v536_v41 = vpop.xlane.xlu2 %535 }
 0x38b   :  { %v546_v42 = vsub.f32 %v525_v3, %v536_v41 }
 0x38d   :  { %v550_v43 = vmul.f32 1.442695, %v546_v42 }
 0x38f   :  { %1274 = vpow2.f32 %v550_v43  ;;  %v414_v44 = vpop.xlane.xlu0 %413 }
 0x390   :  { %v424_v46 = vsub.f32 %v403_v6, %v414_v44 }
 0x392   :  { %v428_v48 = vmul.f32 1.442695, %v424_v46  ;;  %v539_v49 = vpop.xlane.xlu2 %538 }
 0x393   :  { %v547_v50 = vsub.f32 %v527_v10, %v539_v49 }
 0x394   :  { %1276 = vpow2.f32 %v428_v48 }
 0x395   :  { %v1580_v51 = vpop.eup %1274  ;;  %v552_v52 = vmul.f32 1.442695, %v547_v50 }
 0x396   :  { %v558_v53 = vsel %vm336_vm1, %v1580_v51, 0.0 }
 0x397   :  { %1278 = vpow2.f32 %v552_v52  ;;  %559 = vadd.xlane.f32.xlu1 %v558_v53  ;;  %v417_v54 = vpop.xlane.xlu1 %416 }
 0x398   :  { %v425_v55 = vsub.f32 %v405_v15, %v417_v54 }
 0x39a   :  { %v430_v56 = vmul.f32 1.442695, %v425_v55  ;;  %v1584_v57 = vpop.eup %1276  ;;  %v542_v11 = vpop.xlane.xlu2 %541 }
 0x39b   :  { %v436_v59 = vsel %vm336_vm1, %v1584_v57, 0.0  ;;  %v548_v15 = vsub.f32 %v1568_v28, %v542_v11  ;;  %v1247_v11 = vld [vmem:[%s1814_s11] sm:$0xff] }
 0x39c   :  { %1280 = vpow2.f32 %v430_v56 }
 0x39d   :  { %v1586_v58 = vpop.eup %1278 }
 0x39e   :  { %v561_v60 = vsel %vm336_vm1, %v1586_v58, 0.0 }
 0x39f   :  { %437 = vadd.xlane.f32.xlu1 %v436_v59  ;;  %562 = vadd.xlane.f32.xlu2 %v561_v60  ;;  %v420_v61 = vpop.xlane.xlu0 %419 }
 0x3a0   :  { %v426_v62 = vsub.f32 %v408_v32, %v420_v61  ;;  %v1638_v32 = vrot.slane %v1500_v19, 4 }
 0x3a2   :  { %v432_v63 = vmul.f32 1.442695, %v426_v62  ;;  %v1592_v0 = vpop.eup %1280 }
 0x3a3   :  { %v439_v1 = vsel %vm336_vm1, %v1592_v0, 0.0 }
 0x3a4   :  { %1282 = vpow2.f32 %v432_v63 }
 0x3a7   :  { %440 = vadd.xlane.f32.xlu2 %v439_v1  ;;  %v545_v2 = vpop.xlane.xlu0 %544  ;;  %v423_v9 = vpop.xlane.xlu1 %422 }
 0x3a8   :  { %v549_v3 = vsub.f32 %v532_v36, %v545_v2  ;;  %v427_v10 = vsub.f32 %v410_v38, %v423_v9 }
 0x3aa   :  { %v1596_v4 = vpop.eup %1282  ;;  %v556_v5 = vmul.f32 1.442695, %v549_v3  ;;  %v434_v13 = vmul.f32 1.442695, %v427_v10 }
 0x3ab   :  { %v442_v6 = vsel %vm336_vm1, %v1596_v4, 0.0 }
 0x3ac   :  { %443 = vadd.xlane.f32.xlu0 %v442_v6  ;;  %1284 = vpow2.f32 %v556_v5  ;;  %v1248_v6 = vld [vmem:[%s1814_s11 + $0x8] sm:$0xff] }
 0x3ad   :  { %1286 = vpow2.f32 %v434_v13 }
 0x3b2   :  { %v1600_v7 = vpop.eup %1284 }
 0x3b3   :  { %v567_v8 = vsel %vm336_vm1, %v1600_v7, 0.0 }
 0x3b4   :  { %568 = vadd.xlane.f32.xlu0 %v567_v8 }
 0x3b8   :  { %458 = vrot.lane.b32.xlu1 %v1537_v47, %s1340_s25  ;;  %v1287_v47 = vpop.eup %1286 }
 0x3b9   :  { %v445_v21 = vsel %vm336_vm1, %v1287_v47, 0.0 }
 0x3ba   :  { %v581_v42 = vpop.permute.xlu0 %580 }
 0x3bf   :  { %582 = vrot.lane.b32.xlu2 %v1535_v45, %s1345_s0  ;;  %v554_v45 = vmul.f32 1.442695, %v548_v15  ;;  %s1838_s0 = sld [smem:[#allocation7_spill]] }
 0x3c1   :  { %1288 = vpow2.f32 %v554_v45  ;;  %v276_v45 = vrot.slane %v1484_v12, 4 }
 0x3c7   :  { %v1621_v22 = vpop.eup %1288 }
 0x3c8   :  { %210 = vrot.lane.b32.xlu0 %v1500_v19, %s1343_s30  ;;  %v564_v28 = vsel %vm336_vm1, %v1621_v22, 0.0 }
 0x3d0   :  { %214 = vrot.lane.b32.xlu0 %v1502_v20, %s1343_s30 }
 0x3d8   :  { %244 = vrot.lane.b32.xlu0 %v1614_v17, %s1340_s25 }
 0x3e0   :  { %218 = vrot.lane.b32.xlu0 %v1510_v23, %s1343_s30 }
 0x3e2   :  { %446 = vadd.xlane.f32.xlu1 %v445_v21 }
 0x3e8   :  { %565 = vadd.xlane.f32.xlu2 %v564_v28  ;;  %248 = vrot.lane.b32.xlu0 %v1626_v29, %s1340_s25 }
 0x3f0   :  { %254 = vrot.lane.b32.xlu0 %v1500_v19, %s1340_s25 }
 0x3fb   :  { %208 = vrot.lane.b32.xlu1 %v1633_v30, %s1343_s30 }
 0x400   :  { %212 = vrot.lane.b32.xlu2 %v1638_v32, %s1343_s30 }
 0x403   :  { %240 = vrot.lane.b32.xlu1 %v1638_v32, %s1340_s25 }
 0x408   :  { %242 = vrot.lane.b32.xlu2 %v1502_v20, %s1340_s25 }
 0x40a   :  { %v560_v34 = vpop.xlane.xlu1 %559 }
 0x40b   :  { %246 = vrot.lane.b32.xlu1 %v1510_v23, %s1340_s25 }
 0x410   :  { %216 = vrot.lane.b32.xlu2 %v1614_v17, %s1343_s30 }
 0x412   :  { %v563_v33 = vpop.xlane.xlu2 %562  ;;  %v438_v36 = vpop.xlane.xlu1 %437 }
 0x413   :  { %220 = vrot.lane.b32.xlu1 %v1626_v29, %s1343_s30  ;;  %1290 = vrcp.f32 %v563_v33 }
 0x414   :  { %1292 = vrcp.f32 %v560_v34 }
 0x418   :  { %222 = vrot.lane.b32.xlu2 %v1516_v26, %s1343_s30 }
 0x419   :  { %v1291_v37 = vpop.eup %1290 }
 0x41a   :  { %v441_v35 = vpop.xlane.xlu2 %440  ;;  %v1293_v39 = vpop.eup %1292  ;;  %v575_v40 = vmul.f32 %v1291_v37, %v1586_v58 }
 0x41b   :  { %250 = vrot.lane.b32.xlu1 %v1516_v26, %s1340_s25  ;;  %1294 = vrcp.f32 %v441_v35  ;;  %v574_v43 = vmul.f32 %v1293_v39, %v1580_v51 }
 0x41c   :  { %1296 = vrcp.f32 %v438_v36 }
 0x41d   :  { %v578_v48 = vpack.c.bf16 %v575_v40, %v574_v43 }
 0x41f   :  { %v444_v53 = vpop.xlane.xlu0 %443 }
 0x420   :  { %252 = vrot.lane.b32.xlu2 %v1633_v30, %s1340_s25  ;;  %1298 = vrcp.f32 %v444_v53 }
 0x421   :  { %v1295_v41 = vpop.eup %1294 }
 0x422   :  { %v583_v38 = vpop.permute.xlu2 %582  ;;  %v1297_v44 = vpop.eup %1296  ;;  %v453_v46 = vmul.f32 %v1295_v41, %v1592_v0 }
 0x423   :  { %598 = vmatpush.bf16.msrb.mxu1 %v583_v38  ;;  %v452_v49 = vmul.f32 %v1297_v44, %v1584_v57 }
 0x425   :  { %v456_v52 = vpack.c.bf16 %v453_v46, %v452_v49 }
 0x426   :  { %v1299_v58 = vpop.eup %1298 }
 0x427   :  { %599 = vmatpush.bf16.msrb.mxu1 %v581_v42  ;;  %v569_v54 = vpop.xlane.xlu0 %568  ;;  %v454_v57 = vmul.f32 %v1299_v58, %v1596_v4 }
 0x42a   :  { %v459_v50 = vpop.permute.xlu1 %458  ;;  %1179 = vmatmul.msk.bf16.vlgmr.msrb.gmra.mxu1 %vm336_vm1, %v578_v48 }
 0x42b   :  { %477 = vmatpush.bf16.msrb.mxu2 %v459_v50  ;;  %789 = vmatpush.bf16.msra.mxu1 %v1248_v6 }
 0x42e   :  { %1175 = vmatmul.msk.bf16.vlgmr.msrb.gmra.mxu2 %vm336_vm1, %v456_v52 }
 0x42f   :  { %790 = vmatpush.bf16.msra.mxu1 %v1247_v11 }
 0x43a   :  { %v211_v55 = vpop.permute.xlu0 %210 }
 0x442   :  { %v215_v56 = vpop.permute.xlu0 %214 }
 0x443   :  { %v235_v40 = vadd.f32 %v215_v56, %v1614_v17 }
 0x44a   :  { %v245_v62 = vpop.permute.xlu0 %244 }
 0x452   :  { %v219_v13 = vpop.permute.xlu0 %218 }
 0x453   :  { %v237_v56 = vadd.f32 %v219_v13, %v1626_v29 }
 0x455   :  { %v447_v51 = vpop.xlane.xlu1 %446 }
 0x456   :  { %1300 = vrcp.f32 %v447_v51  ;;  %v278_v51 = vrot.slane %v1492_v16, 4 }
 0x457   :  { %1302 = vrcp.f32 %v569_v54 }
 0x45b   :  { %v566_v59 = vpop.xlane.xlu2 %565 }
 0x45c   :  { %v1301_v60 = vpop.eup %1300  ;;  %1304 = vrcp.f32 %v566_v59 }
 0x45d   :  { %v455_v61 = vmul.f32 %v1301_v60, %v1287_v47  ;;  %v1303_v0 = vpop.eup %1302 }
 0x45e   :  { %v577_v5 = vmul.f32 %v1303_v0, %v1600_v7  ;;  %v233_v7 = vadd.f32 %v211_v55, %v1638_v32 }
 0x45f   :  { %v457_v63 = vpack.c.bf16 %v455_v61, %v454_v57 }
 0x461   :  { %1176 = vmatmul.msk.bf16.gmra.mxu2 %vm336_vm1, %v457_v63 }
 0x462   :  { %v1305_v1 = vpop.eup %1304 }
 0x463   :  { %v213_v2 = vpop.permute.xlu2 %212  ;;  %v576_v3 = vmul.f32 %v1305_v1, %v1621_v22  ;;  %v249_v22 = vpop.permute.xlu0 %248 }
 0x464   :  { %v234_v8 = vadd.f32 %v213_v2, %v1502_v20 }
 0x465   :  { %v579_v9 = vpack.c.bf16 %v577_v5, %v576_v3 }
 0x466   :  { %v266_v4 = vadd.f32 %v245_v62, %v234_v8 }
 0x467   :  { %1180 = vmatmul.msk.bf16.gmra.mxu1 %vm336_vm1, %v579_v9 }
 0x468   :  { %v286_v10 = vadd.f32 %v266_v4, %v1488_v14  ;;  %v1250_v4 = vld [vmem:[%s1818_s12 + $0x8] sm:$0xff] }
 0x469   :  { %752 = vmatpush.bf16.msrb.mxu0 %v1250_v4 }
 0x46a   :  { %697 = vst [vmem:[#allocation1 + $0x10] ss:$2 sm:$0xff] %v286_v10  ;;  %v1249_v10 = vld [vmem:[%s1818_s12] sm:$0xff] }
 0x46b   :  { %v243_v15 = vpop.permute.xlu2 %242  ;;  %v255_v42 = vpop.permute.xlu0 %254 }
 0x46c   :  { %v265_v20 = vadd.f32 %v243_v15, %v233_v7  ;;  %v1269_v15 = vld [vmem:[%s1816_s10] ss:$0 sm:$0xff] }
 0x46d   :  { %v209_v47 = vpop.permute.xlu1 %208  ;;  %753 = vmatpush.bf16.msrb.mxu0 %v1249_v10 }
 0x46e   :  { %v285_v21 = vadd.f32 %v276_v45, %v265_v20  ;;  %v232_v33 = vadd.f32 %v209_v47, %v1500_v19  ;;  %v279_v19 = vrot.slane %v1496_v18, 4 }
 0x470   :  { %695 = vst [vmem:[#allocation1 + $0x1] ss:$2 sm:$0xff] %v285_v21 }
 0x473   :  { %v217_v28 = vpop.permute.xlu2 %216 }
 0x474   :  { %v236_v34 = vadd.f32 %v217_v28, %v1510_v23  ;;  %v277_v23 = vrot.slane %v1488_v14, 4 }
 0x475   :  { %v241_v35 = vpop.permute.xlu1 %240 }
 0x476   :  { %v268_v36 = vadd.f32 %v249_v22, %v236_v34  ;;  %v264_v37 = vadd.f32 %v241_v35, %v232_v33 }
 0x478   :  { %v288_v32 = vadd.f32 %v268_v36, %v1492_v16  ;;  %v284_v38 = vadd.f32 %v264_v37, %v1484_v12 }
 0x47a   :  { %701 = vst [vmem:[#allocation1 + $0x20] ss:$2 sm:$0xff] %v288_v32 }
 0x47b   :  { %693 = vst [vmem:[#allocation1] ss:$2 sm:$0xff] %v284_v38  ;;  %v223_v39 = vpop.permute.xlu2 %222 }
 0x47c   :  { %v239_v41 = vadd.f32 %v223_v39, %v1633_v30 }
 0x47d   :  { %v247_v43 = vpop.permute.xlu1 %246 }
 0x47e   :  { %v271_v44 = vadd.f32 %v255_v42, %v239_v41  ;;  %v267_v46 = vadd.f32 %v247_v43, %v235_v40  ;;  %v1253_v41 = vld [vmem:[%s1819_s14 + $0x10] sm:$0xff]  ;;  %v1252_v42 = vld [vmem:[%s1819_s14 + $0x8] sm:$0xff]  ;;  %v1251_v43 = vld [vmem:[%s1819_s14] sm:$0xff] }
 0x480   :  { %v291_v48 = vadd.f32 %v279_v19, %v271_v44  ;;  %v287_v49 = vadd.f32 %v277_v23, %v267_v46  ;;  %v1270_v46 = vld [vmem:[%s1817_s13] ss:$0 sm:$0xff] }
 0x482   :  { %707 = vst [vmem:[#allocation1 + $0x31] ss:$2 sm:$0xff] %v291_v48  ;;  %v708_v30 = vld.sshfl [vmem:[#allocation1] sm:$0xff pattern:$0x75316420] }
 0x483   :  { %699 = vst [vmem:[#allocation1 + $0x11] ss:$2 sm:$0xff] %v287_v49  ;;  %v253_v52 = vpop.permute.xlu2 %252 }
 0x485   :  { %v221_v12 = vpop.permute.xlu1 %220 }
 0x486   :  { %v238_v50 = vadd.f32 %v221_v12, %v1516_v26  ;;  %v1246_v26 = vld [vmem:[%s1815_s9 + $0x8] sm:$0xff] }
 0x487   :  { %634 = vmatpush.bf16.msrb.mxu3 %v1246_v26 }
 0x488   :  { %v270_v53 = vadd.f32 %v253_v52, %v238_v50 }
 0x48a   :  { %v290_v17 = vadd.f32 %v270_v53, %v1496_v18  ;;  %v709_v54 = vld.sshfl [vmem:[#allocation1 + $0x10] sm:$0xff pattern:$0x75316420]  ;;  %v1245_v18 = vld [vmem:[%s1815_s9] sm:$0xff] }
 0x48b   :  { %v716_v55 = vpack.c.bf16 %v709_v54, %v708_v30  ;;  %665 = vmatpush.bf16.msra.mxu2 %v1245_v18  ;;  %847 = vmatpush.bf16.msra.mxu3 %v1253_v41 }
 0x48c   :  { %705 = vst [vmem:[#allocation1 + $0x30] ss:$2 sm:$0xff] %v290_v17 }
 0x48d   :  { %1211 = vmatmul.msk.bf16.vlgmr.msra.gmra.mxu1 %vm336_vm1, %v716_v55  ;;  %v251_v14 = vpop.permute.xlu1 %250 }
 0x48e   :  { %v269_v58 = vadd.f32 %v251_v14, %v237_v56 }
 0x48f   :  { %848 = vmatpush.bf16.msra.mxu3 %v1252_v42 }
 0x490   :  { %v289_v59 = vadd.f32 %v278_v51, %v269_v58 }
 0x492   :  { %703 = vst [vmem:[#allocation1 + $0x21] ss:$2 sm:$0xff] %v289_v59  ;;  %v1254_v59 = vld [vmem:[%s1821_s15] sm:$0xff] }
 0x493   :  { %v711_v29 = vld.sshfl [vmem:[#allocation1 + $0x30] sm:$0xff pattern:$0x75316420]  ;;  %849 = vmatpush.bf16.msra.mxu3 %v1251_v43  ;;  %892 = vmatpush.bf16.msrb.mxu2 %v1254_v59 }
 0x499   :  { %v710_v60 = vld.sshfl [vmem:[#allocation1 + $0x20] sm:$0xff pattern:$0x75316420] }
 0x49a   :  { %v717_v57 = vpack.c.bf16 %v711_v29, %v710_v60 }
 0x49d   :  { %1212 = vmatmul.msk.bf16.gmra.mxu1 %vm336_vm1, %v717_v57 }
 0x4a7   :  { %v601_v61 = vpop.f32.mrf.mxu1 }
 0x4af   :  { %v603_v16 = vpop.f32.mrf.mxu1 }
 0x4b0   :  { %v611_v62 = vpack.c.bf16 %v603_v16, %v601_v61 }
 0x4b1   :  { %v479_v63 = vpop.f32.mrf.mxu2 }
 0x4b2   :  { %1185 = vmatmul.msk.bf16.vlgmr.msrb.gmra.mxu3 %vm380_vm2, %v611_v62 }
 0x4b9   :  { %v481_v0 = vpop.f32.mrf.mxu2 }
 0x4ba   :  { %v489_v1 = vpack.c.bf16 %v481_v0, %v479_v63 }
 0x4bc   :  { %1191 = vmatmul.msk.bf16.vlgmr.msra.gmra.mxu2 %vm380_vm2, %v489_v1 }
 0x4e4   :  { %v484_v2 = vpop.f32.mrf.mxu2  ;;  %v606_v3 = vpop.f32.mrf.mxu1 }
 0x4ec   :  { %v486_v5 = vpop.f32.mrf.mxu2  ;;  %v608_v6 = vpop.f32.mrf.mxu1 }
 0x4ed   :  { %v490_v8 = vpack.c.bf16 %v486_v5, %v484_v2  ;;  %v612_v9 = vpack.c.bf16 %v608_v6, %v606_v3 }
 0x4ef   :  { %1186 = vmatmul.msk.bf16.gmra.mxu3 %vm380_vm2, %v612_v9  ;;  %1192 = vmatmul.msk.bf16.gmra.mxu2 %vm380_vm2, %v490_v8 }
 0x50a   :  { %v792_v19 = vpop.f32.mrf.mxu1 }
 0x512   :  { %v794_v48 = vpop.f32.mrf.mxu1 }
 0x51a   :  { %v797_v17 = vpop.f32.mrf.mxu1 }
 0x522   :  { %v799_v55 = vpop.f32.mrf.mxu1 }
 0x535   :  { %v636_v11 = vpop.f32.mrf.mxu3 }
 0x53d   :  { %v638_v45 = vpop.f32.mrf.mxu3 }
 0x53f   :  { %v667_v13 = vpop.f32.mrf.mxu2 }
 0x540   :  { %v668_v7 = vadd.f32 %v667_v13, %v636_v11 }
 0x542   :  { %v681_v21 = vadd.f32 %v1269_v15, %v668_v7 }
 0x547   :  { %v669_v20 = vpop.f32.mrf.mxu2 }
 0x548   :  { %v670_v47 = vadd.f32 %v669_v20, %v638_v45 }
 0x54a   :  { %v682_v22 = vadd.f32 %v1269_v15, %v670_v47 }
 0x54c   :  { %v722_v28 = vpack.c.bf16 %v682_v22, %v681_v21 }
 0x54e   :  { %1201 = vmatmul.msk.bf16.vlgmr.msrb.gmra.mxu0 %vm336_vm1, %v722_v28 }
 0x572   :  { %v641_v33 = vpop.f32.mrf.mxu3  ;;  %v672_v34 = vpop.f32.mrf.mxu2 }
 0x573   :  { %v673_v35 = vadd.f32 %v672_v34, %v641_v33  ;;  %v24_v33 = vstv %s1823_s18 }
 0x574   :  { %25 = vst [vmem:[#allocation2] sm:$0x1] %v24_v33 }
 0x575   :  { %v683_v38 = vadd.f32 %v1269_v15, %v673_v35 }
 0x57a   :  { %v643_v36 = vpop.f32.mrf.mxu3  ;;  %v674_v37 = vpop.f32.mrf.mxu2 }
 0x57b   :  { %v675_v32 = vadd.f32 %v674_v37, %v643_v36 }
 0x57d   :  { %v684_v39 = vadd.f32 %v1269_v15, %v675_v32 }
 0x57f   :  { %v723_v40 = vpack.c.bf16 %v684_v39, %v683_v38 }
 0x581   :  { %1202 = vmatmul.msk.bf16.gmra.mxu0 %vm336_vm1, %v723_v40 }
 0x5cb   :  { %v755_v44 = vpop.f32.mrf.mxu0 }
 0x5cc   :  { %v793_v23 = vadd.f32 %v792_v19, %v755_v44 }
 0x5ce   :  { %v1726_v50 = vadd.f32 %v1270_v46, %v793_v23 }
 0x5d3   :  { %v757_v49 = vpop.f32.mrf.mxu0 }
 0x5d4   :  { %v795_v12 = vadd.f32 %v794_v48, %v757_v49 }
 0x5d6   :  { %v1728_v52 = vadd.f32 %v1270_v46, %v795_v12 }
 0x5d8   :  { %v810_v53 = vpack.c.bf16 %v1728_v52, %v1726_v50 }
 0x5da   :  { %1225 = vmatmul.msk.bf16.vlgmr.msra.gmra.mxu3 %vm103_vm0, %v810_v53 }
 0x5fe   :  { %v760_v30 = vpop.f32.mrf.mxu0 }
 0x5ff   :  { %v798_v54 = vadd.f32 %v797_v17, %v760_v30  ;;  %v1346_v30 = vmov 0  }
 0x600   :  { %1266 = vset.pattern.permute.xlu2 %v1346_v30  ;;  %1265 = vset.pattern.permute.xlu1 %v1346_v30 }
 0x601   :  { %v1733_v51 = vadd.f32 %v1270_v46, %v798_v54  ;;  %1264 = vset.pattern.permute.xlu0 %v1346_v30 }
 0x606   :  { %v762_v56 = vpop.f32.mrf.mxu0 }
 0x607   :  { %v800_v14 = vadd.f32 %v799_v55, %v762_v56  ;;  %v1273_v56 = vld [vmem:[#allocation2] ss:$0 sm:$0xff] }
 0x609   :  { %v1735_v58 = vadd.f32 %v1270_v46, %v800_v14 }
 0x60b   :  { %v811_v26 = vpack.c.bf16 %v1735_v58, %v1733_v51 }
 0x60d   :  { %1226 = vmatmul.msk.bf16.gmra.mxu3 %vm103_vm0, %v811_v26 }
 0x65d   :  { %v851_v18 = vpop.f32.mrf.mxu3 }
 0x65e   :  { %v852_v60 = vadd.f32 %v851_v18, %v1514_v25 }
 0x660   :  { %1306 = vtanh.f32 %v852_v60 }
 0x665   :  { %v853_v29 = vpop.f32.mrf.mxu3 }
 0x666   :  { %v854_v57 = vadd.f32 %v853_v29, %v1524_v31  ;;  %v1307_v61 = vpop.eup %1306  ;;  %v1271_v31 = vld [vmem:[%s1838_s0] ss:$0 sm:$0xff] }
 0x668   :  { %1308 = vtanh.f32 %v854_v57 }
 0x66e   :  { %v1309_v16 = vpop.eup %1308 }
 0x66f   :  { %v865_v62 = vpack.c.bf16 %v1309_v16, %v1307_v61 }
 0x671   :  { %1231 = vmatmul.msk.bf16.vlgmr.msrb.gmra.mxu2 %vm380_vm2, %v865_v62 }
 0x690   :  { %v856_v63 = vpop.f32.mrf.mxu3 }
 0x691   :  { %v857_v0 = vadd.f32 %v856_v63, %v1512_v24  ;;  %v1272_v24 = vld [vmem:[%s1822_s17] ss:$0 sm:$0xff] }
 0x693   :  { %1310 = vtanh.f32 %v857_v0 }
 0x698   :  { %v858_v1 = vpop.f32.mrf.mxu3 }
 0x699   :  { %v859_v2 = vadd.f32 %v858_v1, %v1518_v27  ;;  %v1311_v3 = vpop.eup %1310 }
 0x69b   :  { %1312 = vtanh.f32 %v859_v2 }
 0x6a1   :  { %v1313_v25 = vpop.eup %1312 }
 0x6a2   :  { %v866_v5 = vpack.c.bf16 %v1313_v25, %v1311_v3 }
 0x6a4   :  { %1232 = vmatmul.msk.bf16.gmra.mxu2 %vm380_vm2, %v866_v5 }
 0x6f4   :  { %v894_v6 = vpop.f32.mrf.mxu2 }
 0x6f5   :  { %v895_v8 = vadd.f32 %v1271_v31, %v894_v6 }
 0x6f7   :  { %1314 = vtanh.f32 %v895_v8 }
 0x6fc   :  { %v896_v9 = vpop.f32.mrf.mxu2 }
 0x6fd   :  { %v1315_v27 = vpop.eup %1314  ;;  %v897_v4 = vadd.f32 %v1271_v31, %v896_v9 }
 0x6fe   :  { %v924_v10 = vmul.f32 %v1315_v27, %v1272_v24  ;;  %v912_v11 = vrot.slane %v1315_v27, 4 }
 0x6ff   :  { %1316 = vtanh.f32 %v897_v4 }
 0x700   :  { %v933_v13 = vsel %vm932_vm3, %v924_v10, 0.0  ;;  %v925_v7 = vmul.f32 %v1272_v24, %v912_v11 }
 0x701   :  { %934 = vadd.xlane.f32.xlu1 %v933_v13 }
 0x702   :  { %v936_v15 = vsel %vm932_vm3, %v925_v7, 0.0 }
 0x703   :  { %937 = vadd.xlane.f32.xlu2 %v936_v15 }
 0x705   :  { %v1317_v45 = vpop.eup %1316 }
 0x706   :  { %v926_v20 = vmul.f32 %v1317_v45, %v1272_v24  ;;  %v913_v47 = vrot.slane %v1317_v45, 4 }
 0x708   :  { %v939_v21 = vsel %vm932_vm3, %v926_v20, 0.0  ;;  %v927_v22 = vmul.f32 %v1272_v24, %v913_v47 }
 0x709   :  { %940 = vadd.xlane.f32.xlu0 %v939_v21 }
 0x70a   :  { %v942_v28 = vsel %vm932_vm3, %v927_v22, 0.0 }
 0x70b   :  { %943 = vadd.xlane.f32.xlu1 %v942_v28 }
 0x727   :  { %v899_v34 = vpop.f32.mrf.mxu2 }
 0x728   :  { %v900_v35 = vadd.f32 %v1271_v31, %v899_v34 }
 0x72a   :  { %1318 = vtanh.f32 %v900_v35 }
 0x72f   :  { %v901_v36 = vpop.f32.mrf.mxu2 }
 0x730   :  { %v1319_v37 = vpop.eup %1318  ;;  %v902_v32 = vadd.f32 %v1271_v31, %v901_v36 }
 0x731   :  { %v928_v38 = vmul.f32 %v1319_v37, %v1272_v24  ;;  %v914_v39 = vrot.slane %v1319_v37, 4 }
 0x732   :  { %1320 = vtanh.f32 %v902_v32 }
 0x733   :  { %v945_v40 = vsel %vm932_vm3, %v928_v38, 0.0  ;;  %v929_v41 = vmul.f32 %v1272_v24, %v914_v39 }
 0x734   :  { %946 = vadd.xlane.f32.xlu2 %v945_v40 }
 0x735   :  { %v948_v42 = vsel %vm932_vm3, %v929_v41, 0.0 }
 0x736   :  { %949 = vadd.xlane.f32.xlu0 %v948_v42 }
 0x738   :  { %v1321_v43 = vpop.eup %1320 }
 0x739   :  { %v930_v19 = vmul.f32 %v1321_v43, %v1272_v24  ;;  %v915_v44 = vrot.slane %v1321_v43, 4 }
 0x73b   :  { %v951_v23 = vsel %vm932_vm3, %v930_v19, 0.0  ;;  %v931_v46 = vmul.f32 %v1272_v24, %v915_v44 }
 0x73c   :  { %952 = vadd.xlane.f32.xlu1 %v951_v23 }
 0x73d   :  { %v954_v48 = vsel %vm932_vm3, %v931_v46, 0.0 }
 0x73e   :  { %955 = vadd.xlane.f32.xlu2 %v954_v48 }
 0x774   :  { %v935_v49 = vpop.xlane.xlu1 %934 }
 0x775   :  { %v961_v18 = vadd.f32 %v1273_v56, %v935_v49 }
 0x776   :  { %v938_v12 = vpop.xlane.xlu2 %937 }
 0x777   :  { %v962_v26 = vadd.f32 %v1273_v56, %v938_v12  ;;  %v970_v25 = vsel %vm969_vm4, %v961_v18, -inf }
 0x779   :  { %v971_v63 = vsel %vm969_vm4, %v962_v26, -inf }
 0x77c   :  { %v941_v53 = vpop.xlane.xlu0 %940 }
 0x77d   :  { %v963_v29 = vadd.f32 %v1273_v56, %v941_v53 }
 0x77e   :  { %v944_v17 = vpop.xlane.xlu1 %943 }
 0x77f   :  { %v964_v57 = vadd.f32 %v1273_v56, %v944_v17  ;;  %v972_v5 = vsel %vm969_vm4, %v963_v29, -inf }
 0x781   :  { %v973_v31 = vsel %vm969_vm4, %v964_v57, -inf }
 0x7a7   :  { %v947_v54 = vpop.xlane.xlu2 %946 }
 0x7a8   :  { %v965_v59 = vadd.f32 %v1273_v56, %v947_v54 }
 0x7a9   :  { %v950_v55 = vpop.xlane.xlu0 %949 }
 0x7aa   :  { %v966_v14 = vadd.f32 %v1273_v56, %v950_v55  ;;  %v974_v0 = vsel %vm969_vm4, %v965_v59, -inf }
 0x7ab   :  { %v975_v8 = vmax.f32 %v970_v25, %v974_v0 }
 0x7ac   :  { %v976_v61 = vsel %vm969_vm4, %v966_v14, -inf }
 0x7ad   :  { %v977_v3 = vmax.f32 %v971_v63, %v976_v61 }
 0x7af   :  { %v953_v60 = vpop.xlane.xlu1 %952  ;;  %v982_v27 = vmax.f32 %v975_v8, %v977_v3  ;;  %v1037_v3 = vrot.slane %v1726_v50, 4 }
 0x7b0   :  { %v967_v16 = vadd.f32 %v1273_v56, %v953_v60 }
 0x7b1   :  { %v956_v62 = vpop.xlane.xlu2 %955 }
 0x7b2   :  { %v978_v1 = vsel %vm969_vm4, %v967_v16, -inf  ;;  %v968_v2 = vadd.f32 %v1273_v56, %v956_v62 }
 0x7b3   :  { %v979_v24 = vmax.f32 %v972_v5, %v978_v1 }
 0x7b4   :  { %v980_v6 = vsel %vm969_vm4, %v968_v2, -inf }
 0x7b5   :  { %v981_v9 = vmax.f32 %v973_v31, %v980_v6 }
 0x7b7   :  { %v983_v4 = vmax.f32 %v979_v24, %v981_v9 }
 0x7b9   :  { %v984_v10 = vmax.f32 %v982_v27, %v983_v4  ;;  %v1038_v4 = vrot.slane %v1728_v52, 4 }
 0x7bb   :  { %v985_v11 = vsub.f32 %v961_v18, %v984_v10  ;;  %v986_v13 = vsub.f32 %v962_v26, %v984_v10  ;;  %v987_v7 = vsub.f32 %v963_v29, %v984_v10  ;;  %v988_v15 = vsub.f32 %v964_v57, %v984_v10 }
 0x7bc   :  { %v989_v45 = vsub.f32 %v965_v59, %v984_v10  ;;  %v990_v22 = vsub.f32 %v966_v14, %v984_v10  ;;  %v991_v33 = vsub.f32 %v967_v16, %v984_v10  ;;  %v992_v35 = vsub.f32 %v968_v2, %v984_v10 }
 0x7bd   :  { %v993_v20 = vmul.f32 1.442695, %v985_v11  ;;  %v995_v47 = vmul.f32 1.442695, %v986_v13  ;;  %v997_v21 = vmul.f32 1.442695, %v987_v7 }
 0x7be   :  { %v999_v28 = vmul.f32 1.442695, %v988_v15  ;;  %v1001_v34 = vmul.f32 1.442695, %v989_v45  ;;  %v1003_v36 = vmul.f32 1.442695, %v990_v22 }
 0x7bf   :  { %1322 = vpow2.f32 %v993_v20  ;;  %v1005_v37 = vmul.f32 1.442695, %v991_v33  ;;  %v1007_v39 = vmul.f32 1.442695, %v992_v35 }
 0x7c0   :  { %1324 = vpow2.f32 %v995_v47 }
 0x7c1   :  { %1326 = vpow2.f32 %v997_v21  ;;  %v1039_v21 = vrot.slane %v1733_v51, 4 }
 0x7c2   :  { %1328 = vpow2.f32 %v999_v28 }
 0x7c3   :  { %1330 = vpow2.f32 %v1001_v34  ;;  %v1040_v34 = vrot.slane %v1735_v58, 4 }
 0x7c4   :  { %1332 = vpow2.f32 %v1003_v36 }
 0x7c5   :  { %v1323_v32 = vpop.eup %1322  ;;  %1334 = vpow2.f32 %v1005_v37 }
 0x7c6   :  { %v1325_v38 = vpop.eup %1324  ;;  %v1009_v40 = vsel %vm969_vm4, %v1323_v32, 0.0  ;;  %1336 = vpow2.f32 %v1007_v39 }
 0x7c7   :  { %v1327_v41 = vpop.eup %1326  ;;  %v1010_v42 = vsel %vm969_vm4, %v1325_v38, 0.0 }
 0x7c8   :  { %v1329_v43 = vpop.eup %1328  ;;  %v1011_v19 = vadd.f32 %v1010_v42, %v1009_v40  ;;  %v1012_v44 = vsel %vm969_vm4, %v1327_v41, 0.0 }
 0x7c9   :  { %v1331_v23 = vpop.eup %1330  ;;  %v1014_v48 = vsel %vm969_vm4, %v1329_v43, 0.0 }
 0x7ca   :  { %v1013_v46 = vadd.f32 %v1012_v44, %v1011_v19  ;;  %v1333_v49 = vpop.eup %1332  ;;  %v1016_v53 = vsel %vm969_vm4, %v1331_v23, 0.0 }
 0x7cb   :  { %v1335_v17 = vpop.eup %1334  ;;  %v1018_v54 = vsel %vm969_vm4, %v1333_v49, 0.0 }
 0x7cc   :  { %v1015_v12 = vadd.f32 %v1014_v48, %v1013_v46  ;;  %v1337_v55 = vpop.eup %1336  ;;  %v1020_v14 = vsel %vm969_vm4, %v1335_v17, 0.0 }
 0x7cd   :  { %v1022_v59 = vsel %vm969_vm4, %v1337_v55, 0.0 }
 0x7ce   :  { %v1017_v30 = vadd.f32 %v1016_v53, %v1015_v12 }
 0x7d0   :  { %v1019_v56 = vadd.f32 %v1018_v54, %v1017_v30 }
 0x7d2   :  { %v1021_v26 = vadd.f32 %v1020_v14, %v1019_v56 }
 0x7d4   :  { %v1023_v18 = vadd.f32 %v1022_v59, %v1021_v26 }
 0x7d6   :  { %1338 = vrcp.f32 %v1023_v18 }
 0x7dc   :  { %v1339_v60 = vpop.eup %1338 }
 0x7dd   :  { %v1027_v29 = vmul.f32 %v1339_v60, %v1327_v41  ;;  %v1026_v57 = vmul.f32 %v1339_v60, %v1325_v38  ;;  %v1025_v61 = vmul.f32 %v1339_v60, %v1323_v32  ;;  %v1029_v16 = vmul.f32 %v1339_v60, %v1331_v23 }
 0x7de   :  { %v1028_v62 = vmul.f32 %v1339_v60, %v1329_v43  ;;  %v1032_v63 = vmul.f32 %v1339_v60, %v1337_v55  ;;  %v1031_v0 = vmul.f32 %v1339_v60, %v1335_v17  ;;  %v1030_v1 = vmul.f32 %v1339_v60, %v1333_v49 }
 0x7df   :  { %1057 = vperm.xlu2 %1266, %v1027_v29   ;;  %1052 = vperm.xlu1 %1265, %v1026_v57  }
 0x7e0   :  { %1047 = vperm.xlu0 %1264, %v1025_v61  }
 0x7e7   :  { %1067 = vperm.xlu2 %1266, %v1029_v16   ;;  %1062 = vperm.xlu1 %1265, %v1028_v62  }
 0x7e8   :  { %1082 = vperm.xlu0 %1264, %v1032_v63  }
 0x7ef   :  { %1077 = vperm.xlu2 %1266, %v1031_v0   ;;  %1072 = vperm.xlu1 %1265, %v1030_v1  }
 0x839   :  { %v1058_v2 = vpop.permute.xlu2 %1057 }
 0x83a   :  { %v1087_v27 = vmul.f32 %v1058_v2, %v1728_v52 }
 0x83c   :  { %v1097_v7 = vsel %vm1093_vm5, %v1087_v27, 0.0 }
 0x841   :  { %v1068_v8 = vpop.permute.xlu2 %1067 }
 0x849   :  { %v1078_v20 = vpop.permute.xlu2 %1077 }
 0x84a   :  { %v1091_v52 = vmul.f32 %v1078_v20, %v1735_v58 }
 0x84c   :  { %v1105_v39 = vsel %vm1093_vm5, %v1091_v52, 0.0 }
 0x851   :  { %v1053_v25 = vpop.permute.xlu1 %1052 }
 0x852   :  { %v1086_v5 = vmul.f32 %v1053_v25, %v1037_v3  ;;  %v1048_v31 = vpop.permute.xlu0 %1047 }
 0x853   :  { %v1085_v6 = vmul.f32 %v1048_v31, %v1726_v50  ;;  %v1089_v50 = vmul.f32 %v1068_v8, %v1733_v51  ;;  %v1109_v51 = vld [vmem:[%s1824_s2] sm:$0xf] }
 0x854   :  { %v1095_v24 = vsel %vm1093_vm5, %v1086_v5, 0.0 }
 0x855   :  { %v1094_v9 = vsel %vm1093_vm5, %v1085_v6, 0.0  ;;  %v1101_v33 = vsel %vm1093_vm5, %v1089_v50, 0.0 }
 0x856   :  { %v1096_v10 = vadd.f32 %v1095_v24, %v1094_v9 }
 0x858   :  { %v1098_v45 = vadd.f32 %v1097_v7, %v1096_v10 }
 0x859   :  { %v1063_v11 = vpop.permute.xlu1 %1062 }
 0x85a   :  { %v1088_v13 = vmul.f32 %v1063_v11, %v1038_v4  ;;  %v1083_v22 = vpop.permute.xlu0 %1082 }
 0x85b   :  { %v1092_v37 = vmul.f32 %v1083_v22, %v1040_v34 }
 0x85c   :  { %v1099_v15 = vsel %vm1093_vm5, %v1088_v13, 0.0 }
 0x85d   :  { %v1100_v47 = vadd.f32 %v1099_v15, %v1098_v45  ;;  %v1107_v41 = vsel %vm1093_vm5, %v1092_v37, 0.0 }
 0x85f   :  { %v1102_v36 = vadd.f32 %v1101_v33, %v1100_v47 }
 0x861   :  { %v1073_v28 = vpop.permute.xlu1 %1072 }
 0x862   :  { %v1090_v35 = vmul.f32 %v1073_v28, %v1039_v21 }
 0x864   :  { %v1103_v32 = vsel %vm1093_vm5, %v1090_v35, 0.0 }
 0x865   :  { %v1104_v38 = vadd.f32 %v1103_v32, %v1102_v36 }
 0x867   :  { %v1106_v40 = vadd.f32 %v1105_v39, %v1104_v38 }
 0x869   :  { %v1108_v42 = vadd.f32 %v1107_v41, %v1106_v40 }
 0x86b   :  { %v1110_v43 = vmul.f32 %v1109_v51, %v1108_v42 }
 0x86d   :  { %v1111_v19 = vsel %vm1093_vm5, %v1110_v43, 0.0 }
 0x86e   :  { %1112 = vadd.xlane.f32.xlu1 %v1111_v19 }
 0x8e1   :  { %v1113_v58 = vpop.xlane.xlu1 %1112 }
 0x8e2   :  { %1114 = vst.msk [vmem:[%s1825_s19] sm:$0xf] %vm969_vm4, %v1113_v58 }

</bundles_post_ra>
